<compile_context>
chip_gen: v5e
topology: v5e:2x2
jax: 0.10.0
libtpu: 0.0.40
codegen_flags: <defaults>
</compile_context>

<pallas_src>
import functools

import jax
import jax.numpy as jnp
from jax import lax
from jax.experimental import pallas as pl
from jax.experimental.pallas import tpu as pltpu

NEG_FILL = -9.0e15  # plain Python float -> inlined literal (no captured const)


def _mha_kernel(x_ref, yt_ref, w1_ref, bias_ref, o_ref, *, num_heads, k, use_bias):
    """One grid step = one tile of feat_x rows; all heads handled internally."""
    x = x_ref[...]                                      # (TN, Dp) f32
    yt = yt_ref[...]                                    # (Dp, Mp) f32, cols pre-scaled by 1/||y_j||
    w1_all = w1_ref[...]                                # (Dp, H*Dp) f32
    tn, dp = x.shape
    mp = yt.shape[1]

    # ---- head-invariant: fold 1/||x_i|| into x before the projection --------
    n1 = jnp.sqrt(jnp.sum(x * x, axis=1, keepdims=True))           # (TN, 1)
    inv_n1 = jnp.where(n1 > 0.0, 1.0 / n1, 0.0)                    # zero-row guard
    xs = x * inv_n1                                                 # (TN, Dp)

    # ---- one wide MXU matmul covering every head's projection ---------------
    xw_all = jnp.dot(xs, w1_all, preferred_element_type=jnp.float32)  # (TN, H*Dp)

    inv_h = 1.0 / float(num_heads)
    acc = jnp.zeros((tn, mp), jnp.float32)

    for h in range(num_heads):                          # unrolled at trace time
        xw = xw_all[:, h * dp:(h + 1) * dp]             # (TN, Dp) lane-aligned slice
        e = jnp.dot(xw, yt, preferred_element_type=jnp.float32)    # (TN, Mp) scores
        if use_bias:
            e = e + bias_ref[...]                       # NEG_FILL on padded columns

        # Row-wise top-k threshold via k max-peels; the first peel's max doubles
        # as the softmax max (saves one XLU reduction per head).
        # TODO(synk): torch.topk keeps exactly k entries; this >= peel keeps all
        #             values tied with the k-th one (identical when row values
        #             are distinct, which holds a.s. for float inputs).
        thr = jnp.max(e, axis=-1, keepdims=True)        # row max == softmax max
        a_max = thr
        work = e
        for _ in range(k - 1):
            work = jnp.where(work >= thr, -jnp.inf, work)
            thr = jnp.max(work, axis=-1, keepdims=True)

        # Mask fused into the exp; softmax denom reciprocal on a (TN,1) column,
        # 1/num_heads mean folded into the same multiply.
        p = jnp.where(e >= thr, jnp.exp(e - a_max), 0.0)
        rs = jnp.sum(p, axis=-1, keepdims=True)
        acc = acc + p * (pl.reciprocal(rs) * inv_h)

    o_ref[...] = acc


def multi_head_attention(feat_x, feat_y, w1_stack, k, *, row_tile=256):
    """feat_x: (N, D), feat_y: (M, D), w1_stack: (H, D, D), k: python int."""
    H, D, D2 = w1_stack.shape
    N, Dx = feat_x.shape
    M, Dy = feat_y.shape
    assert Dx == Dy == D == D2, "PyTorch module requires in_dim == hidden_dim"
    k = int(k)
    assert 1 <= k <= M, "k must satisfy 1 <= k <= feat_y rows (torch.topk)"

    def rup(v, m):
        return ((v + m - 1) // m) * m

    f32 = jnp.float32
    Dp = rup(D, 128)                        # lane-dense feature dim (no extra K padding)
    Mp = rup(M, 128)                        # lane-dense output columns
    # Guarantee >= 2 grid steps so v7x's two TensorCores both get rows.
    TN = max(8, min(rup(row_tile, 8), rup(pl.cdiv(N, 2), 8)))
    Np = rup(N, TN)

    # feat_x: zero-padded row tiles (zeros don't perturb norms / matmuls).
    xp = jnp.zeros((Np, Dp), f32).at[:N, :D].set(feat_x.astype(f32))

    # feat_y: normalize rows by ||y|| ONCE in the wrapper, pre-transpose to (Dp, Mp).
    y32 = feat_y.astype(f32)
    n2 = jnp.sqrt(jnp.sum(y32 * y32, axis=1, keepdims=True))        # (M, 1)
    y_scaled = jnp.where(n2 > 0.0, y32 / n2, 0.0)                   # zero-row guard
    ytp = jnp.zeros((Dp, Mp), f32).at[:D, :M].set(y_scaled.T)

    # Pack all heads' W1 side by side: column block h == head h's (padded) W1.
    w1p = jnp.zeros((H, Dp, Dp), f32).at[:, :D, :D].set(w1_stack.astype(f32))
    w1_all = jnp.transpose(w1p, (1, 0, 2)).reshape(Dp, H * Dp)

    # (1, Mp) NEG_FILL bias row for zero-padded columns (broadcast add in-kernel).
    col_bias = jnp.where(jnp.arange(Mp) < M, 0.0, NEG_FILL).astype(f32).reshape(1, Mp)
    use_bias = M < Mp

    kernel = functools.partial(_mha_kernel, num_heads=H, k=k, use_bias=use_bias)

    # TODO(synk): when N >> M, pre-fold B_h = W1_h @ y_scaled.T (Dp, Mp) in the
    #             wrapper and do a single x @ B_h per head (drops the projection
    #             MACs and the xw_all buffer); for very large D or M, move the
    #             head loop onto a trailing "arbitrary" grid axis to bound
    #             w1_all / xw_all residency under v7x's 64 MiB VMEM.
    out = pl.pallas_call(
        kernel,
        out_shape=jax.ShapeDtypeStruct((Np, Mp), f32),
        grid=(Np // TN,),
        in_specs=[
            pl.BlockSpec((TN, Dp), lambda i: (i, 0)),        # feat_x row tile
            pl.BlockSpec((Dp, Mp), lambda i: (0, 0)),        # y^T (grid-invariant)
            pl.BlockSpec((Dp, H * Dp), lambda i: (0, 0)),    # all heads' W1 (grid-invariant)
            pl.BlockSpec((1, Mp), lambda i: (0, 0)),         # pad-column bias row
            # (v7x: the three invariant specs could take pipeline_mode=pl.Buffered(1)
            #  to halve their residency; omitted for portability.)
        ],
        out_specs=pl.BlockSpec((TN, Mp), lambda i: (i, 0)),
        compiler_params=pltpu.CompilerParams(
            dimension_semantics=("parallel",),               # rows are independent
            vmem_limit_bytes=48 * 1024 * 1024),              # headroom under v7x 64 MiB
    )(xp, ytp, w1_all, col_bias)

    return out[:N, :M]


def _reference(x, y, w1_stack, k):
    """Pure-JAX replica of the PyTorch forward for verification."""
    n1 = jnp.sqrt(jnp.sum(x * x, axis=1, keepdims=True))
    n2 = jnp.sqrt(jnp.sum(y * y, axis=1, keepdims=True))
    rows = jnp.arange(x.shape[0])[:, None]
    heads = []
    for h in range(w1_stack.shape[0]):
        e = (x @ w1_stack[h]) @ y.T / (n1 @ n2.T + 1e-7)
        vals, idx = lax.top_k(e, k)
        A = jnp.full_like(e, NEG_FILL)
        A = A.at[rows, idx].set(vals)
        heads.append(jax.nn.softmax(A, axis=1))
    return jnp.mean(jnp.stack(heads, axis=0), axis=0)


if __name__ == "__main__":
    in_dim = hidden_dim = 32
    num_heads = 8
    N, M = 16, 16
    k = 4

    key = jax.random.PRNGKey(0)
    kx, ky, kw = jax.random.split(key, 3)
    feat_x = jax.random.normal(kx, (N, in_dim), dtype=jnp.float32)
    feat_y = jax.random.normal(ky, (M, in_dim), dtype=jnp.float32)
    # xavier_uniform init for each head's W1 (deterministic, in-script)
    bound = (6.0 / (in_dim + hidden_dim)) ** 0.5
    w1_stack = jax.random.uniform(kw, (num_heads, in_dim, hidden_dim),
                                  minval=-bound, maxval=bound,
                                  dtype=jnp.float32)

    out = multi_head_attention(feat_x, feat_y, w1_stack, k)
    out = jax.block_until_ready(out)

    ref = _reference(feat_x, feat_y, w1_stack, k)
    assert out.shape == (N, M)
    err = float(jnp.max(jnp.abs(out - ref)))
    assert jnp.allclose(out, ref, rtol=1e-5, atol=1e-5), f"max abs err = {err}"
    print("KERNEL_OK")
</pallas_src>

<mosaic_0001>
module attributes {stable_mosaic.version = 11 : i64} {
  func.func @_mha_kernel(%arg0: i32, %arg1: memref<8x128xf32, #tpu.memory_space<vmem>>, %arg2: memref<128x128xf32, #tpu.memory_space<vmem>>, %arg3: memref<128x1024xf32, #tpu.memory_space<vmem>>, %arg4: memref<1x128xf32, #tpu.memory_space<vmem>>, %arg5: memref<8x128xf32, #tpu.memory_space<vmem>>) attributes {dimension_semantics = [#tpu.dimension_semantics<parallel>], iteration_bounds = array<i64: 2>, scalar_prefetch = 0 : i64, scratch_operands = 0 : i64, tpu.core_type = #tpu.core_type<tc>, window_params = [{transform_indices = @transform_0, window_bounds = array<i64: 8, 128>}, {pipeline_mode = #tpu.pipeline_mode<synchronous>, transform_indices = @transform_1, window_bounds = array<i64: 128, 128>}, {pipeline_mode = #tpu.pipeline_mode<synchronous>, transform_indices = @transform_2, window_bounds = array<i64: 128, 1024>}, {pipeline_mode = #tpu.pipeline_mode<synchronous>, transform_indices = @transform_3, window_bounds = array<i64: 1, 128>}, {transform_indices = @transform_4, window_bounds = array<i64: 8, 128>}]} {
    %c0 = arith.constant 0 : index
    %c0_0 = arith.constant 0 : index
    %0 = vector.load %arg1[%c0, %c0_0] : memref<8x128xf32, #tpu.memory_space<vmem>>, vector<8x128xf32>
    %c0_1 = arith.constant 0 : index
    %c0_2 = arith.constant 0 : index
    %1 = vector.load %arg2[%c0_1, %c0_2] : memref<128x128xf32, #tpu.memory_space<vmem>>, vector<128x128xf32>
    %c0_3 = arith.constant 0 : index
    %c0_4 = arith.constant 0 : index
    %2 = vector.load %arg3[%c0_3, %c0_4] : memref<128x1024xf32, #tpu.memory_space<vmem>>, vector<128x1024xf32>
    %3 = arith.mulf %0, %0 : vector<8x128xf32>
    %cst = arith.constant dense<0.000000e+00> : vector<8xf32>
    %4 = vector.multi_reduction <add>, %3, %cst [1] : vector<8x128xf32> to vector<8xf32>
    %5 = vector.shape_cast %4 : vector<8xf32> to vector<8x1xf32>
    %6 = math.sqrt %5 : vector<8x1xf32>
    %cst_5 = arith.constant 0.000000e+00 : f32
    %7 = vector.broadcast %cst_5 : f32 to vector<8x1xf32>
    %8 = arith.cmpf ogt, %6, %7 : vector<8x1xf32>
    %cst_6 = arith.constant 1.000000e+00 : f32
    %9 = vector.broadcast %cst_6 : f32 to vector<8x1xf32>
    %10 = arith.divf %9, %6 : vector<8x1xf32>
    %cst_7 = arith.constant 0.000000e+00 : f32
    %11 = vector.broadcast %cst_7 : f32 to vector<8x1xf32>
    %12 = arith.select %8, %10, %11 : vector<8x1xi1>, vector<8x1xf32>
    %13 = vector.broadcast %12 : vector<8x1xf32> to vector<8x128xf32>
    %14 = arith.mulf %0, %13 : vector<8x128xf32>
    %cst_8 = arith.constant dense<0.000000e+00> : vector<8x1024xf32>
    %15 = tpu.matmul %14, %2, %cst_8 {dimension_numbers = #tpu.dot_dimension_numbers<[1], [0], [0], [1], [0, 0, 1, 1], [], []>} : vector<8x128xf32>, vector<128x1024xf32>, vector<8x1024xf32> -> vector<8x1024xf32>
    %cst_9 = arith.constant 0.000000e+00 : f32
    %16 = vector.broadcast %cst_9 : f32 to vector<8x128xf32>
    %17 = vector.extract_strided_slice %15 {offsets = [0, 0], sizes = [8, 128], strides = [1, 1]} : vector<8x1024xf32> to vector<8x128xf32>
    %cst_10 = arith.constant dense<0.000000e+00> : vector<8x128xf32>
    %18 = tpu.matmul %17, %1, %cst_10 {dimension_numbers = #tpu.dot_dimension_numbers<[1], [0], [0], [1], [0, 0, 1, 1], [], []>} : vector<8x128xf32>, vector<128x128xf32>, vector<8x128xf32> -> vector<8x128xf32>
    %c0_11 = arith.constant 0 : index
    %c0_12 = arith.constant 0 : index
    %19 = vector.load %arg4[%c0_11, %c0_12] : memref<1x128xf32, #tpu.memory_space<vmem>>, vector<1x128xf32>
    %20 = vector.broadcast %19 : vector<1x128xf32> to vector<8x128xf32>
    %21 = arith.addf %18, %20 : vector<8x128xf32>
    %cst_13 = arith.constant dense<0xFF800000> : vector<8xf32>
    %22 = vector.multi_reduction <maximumf>, %21, %cst_13 [1] : vector<8x128xf32> to vector<8xf32>
    %23 = vector.shape_cast %22 : vector<8xf32> to vector<8x1xf32>
    %24 = vector.broadcast %23 : vector<8x1xf32> to vector<8x128xf32>
    %25 = arith.cmpf oge, %21, %24 : vector<8x128xf32>
    %cst_14 = arith.constant 0xFF800000 : f32
    %26 = vector.broadcast %cst_14 : f32 to vector<8x128xf32>
    %27 = arith.select %25, %26, %21 : vector<8x128xi1>, vector<8x128xf32>
    %cst_15 = arith.constant dense<0xFF800000> : vector<8xf32>
    %28 = vector.multi_reduction <maximumf>, %27, %cst_15 [1] : vector<8x128xf32> to vector<8xf32>
    %29 = vector.shape_cast %28 : vector<8xf32> to vector<8x1xf32>
    %30 = vector.broadcast %29 : vector<8x1xf32> to vector<8x128xf32>
    %31 = arith.cmpf oge, %27, %30 : vector<8x128xf32>
    %cst_16 = arith.constant 0xFF800000 : f32
    %32 = vector.broadcast %cst_16 : f32 to vector<8x128xf32>
    %33 = arith.select %31, %32, %27 : vector<8x128xi1>, vector<8x128xf32>
    %cst_17 = arith.constant dense<0xFF800000> : vector<8xf32>
    %34 = vector.multi_reduction <maximumf>, %33, %cst_17 [1] : vector<8x128xf32> to vector<8xf32>
    %35 = vector.shape_cast %34 : vector<8xf32> to vector<8x1xf32>
    %36 = vector.broadcast %35 : vector<8x1xf32> to vector<8x128xf32>
    %37 = arith.cmpf oge, %33, %36 : vector<8x128xf32>
    %cst_18 = arith.constant 0xFF800000 : f32
    %38 = vector.broadcast %cst_18 : f32 to vector<8x128xf32>
    %39 = arith.select %37, %38, %33 : vector<8x128xi1>, vector<8x128xf32>
    %cst_19 = arith.constant dense<0xFF800000> : vector<8xf32>
    %40 = vector.multi_reduction <maximumf>, %39, %cst_19 [1] : vector<8x128xf32> to vector<8xf32>
    %41 = vector.shape_cast %40 : vector<8xf32> to vector<8x1xf32>
    %42 = vector.broadcast %41 : vector<8x1xf32> to vector<8x128xf32>
    %43 = arith.cmpf oge, %21, %42 : vector<8x128xf32>
    %44 = vector.broadcast %23 : vector<8x1xf32> to vector<8x128xf32>
    %45 = arith.subf %21, %44 : vector<8x128xf32>
    %46 = math.exp %45 : vector<8x128xf32>
    %cst_20 = arith.constant 0.000000e+00 : f32
    %47 = vector.broadcast %cst_20 : f32 to vector<8x128xf32>
    %48 = arith.select %43, %46, %47 : vector<8x128xi1>, vector<8x128xf32>
    %cst_21 = arith.constant dense<0.000000e+00> : vector<8xf32>
    %49 = vector.multi_reduction <add>, %48, %cst_21 [1] : vector<8x128xf32> to vector<8xf32>
    %50 = vector.shape_cast %49 : vector<8xf32> to vector<8x1xf32>
    %51 = tpu.reciprocal %50 : vector<8x1xf32> -> vector<8x1xf32>
    %cst_22 = arith.constant 1.250000e-01 : f32
    %52 = vector.broadcast %cst_22 : f32 to vector<8x1xf32>
    %53 = arith.mulf %51, %52 : vector<8x1xf32>
    %54 = vector.broadcast %53 : vector<8x1xf32> to vector<8x128xf32>
    %55 = arith.mulf %48, %54 : vector<8x128xf32>
    %56 = arith.addf %16, %55 : vector<8x128xf32>
    %57 = vector.extract_strided_slice %15 {offsets = [0, 128], sizes = [8, 128], strides = [1, 1]} : vector<8x1024xf32> to vector<8x128xf32>
    %cst_23 = arith.constant dense<0.000000e+00> : vector<8x128xf32>
    %58 = tpu.matmul %57, %1, %cst_23 {dimension_numbers = #tpu.dot_dimension_numbers<[1], [0], [0], [1], [0, 0, 1, 1], [], []>} : vector<8x128xf32>, vector<128x128xf32>, vector<8x128xf32> -> vector<8x128xf32>
    %c0_24 = arith.constant 0 : index
    %c0_25 = arith.constant 0 : index
    %59 = vector.load %arg4[%c0_24, %c0_25] : memref<1x128xf32, #tpu.memory_space<vmem>>, vector<1x128xf32>
    %60 = vector.broadcast %59 : vector<1x128xf32> to vector<8x128xf32>
    %61 = arith.addf %58, %60 : vector<8x128xf32>
    %cst_26 = arith.constant dense<0xFF800000> : vector<8xf32>
    %62 = vector.multi_reduction <maximumf>, %61, %cst_26 [1] : vector<8x128xf32> to vector<8xf32>
    %63 = vector.shape_cast %62 : vector<8xf32> to vector<8x1xf32>
    %64 = vector.broadcast %63 : vector<8x1xf32> to vector<8x128xf32>
    %65 = arith.cmpf oge, %61, %64 : vector<8x128xf32>
    %cst_27 = arith.constant 0xFF800000 : f32
    %66 = vector.broadcast %cst_27 : f32 to vector<8x128xf32>
    %67 = arith.select %65, %66, %61 : vector<8x128xi1>, vector<8x128xf32>
    %cst_28 = arith.constant dense<0xFF800000> : vector<8xf32>
    %68 = vector.multi_reduction <maximumf>, %67, %cst_28 [1] : vector<8x128xf32> to vector<8xf32>
    %69 = vector.shape_cast %68 : vector<8xf32> to vector<8x1xf32>
    %70 = vector.broadcast %69 : vector<8x1xf32> to vector<8x128xf32>
    %71 = arith.cmpf oge, %67, %70 : vector<8x128xf32>
    %cst_29 = arith.constant 0xFF800000 : f32
    %72 = vector.broadcast %cst_29 : f32 to vector<8x128xf32>
    %73 = arith.select %71, %72, %67 : vector<8x128xi1>, vector<8x128xf32>
    %cst_30 = arith.constant dense<0xFF800000> : vector<8xf32>
    %74 = vector.multi_reduction <maximumf>, %73, %cst_30 [1] : vector<8x128xf32> to vector<8xf32>
    %75 = vector.shape_cast %74 : vector<8xf32> to vector<8x1xf32>
    %76 = vector.broadcast %75 : vector<8x1xf32> to vector<8x128xf32>
    %77 = arith.cmpf oge, %73, %76 : vector<8x128xf32>
    %cst_31 = arith.constant 0xFF800000 : f32
    %78 = vector.broadcast %cst_31 : f32 to vector<8x128xf32>
    %79 = arith.select %77, %78, %73 : vector<8x128xi1>, vector<8x128xf32>
    %cst_32 = arith.constant dense<0xFF800000> : vector<8xf32>
    %80 = vector.multi_reduction <maximumf>, %79, %cst_32 [1] : vector<8x128xf32> to vector<8xf32>
    %81 = vector.shape_cast %80 : vector<8xf32> to vector<8x1xf32>
    %82 = vector.broadcast %81 : vector<8x1xf32> to vector<8x128xf32>
    %83 = arith.cmpf oge, %61, %82 : vector<8x128xf32>
    %84 = vector.broadcast %63 : vector<8x1xf32> to vector<8x128xf32>
    %85 = arith.subf %61, %84 : vector<8x128xf32>
    %86 = math.exp %85 : vector<8x128xf32>
    %cst_33 = arith.constant 0.000000e+00 : f32
    %87 = vector.broadcast %cst_33 : f32 to vector<8x128xf32>
    %88 = arith.select %83, %86, %87 : vector<8x128xi1>, vector<8x128xf32>
    %cst_34 = arith.constant dense<0.000000e+00> : vector<8xf32>
    %89 = vector.multi_reduction <add>, %88, %cst_34 [1] : vector<8x128xf32> to vector<8xf32>
    %90 = vector.shape_cast %89 : vector<8xf32> to vector<8x1xf32>
    %91 = tpu.reciprocal %90 : vector<8x1xf32> -> vector<8x1xf32>
    %cst_35 = arith.constant 1.250000e-01 : f32
    %92 = vector.broadcast %cst_35 : f32 to vector<8x1xf32>
    %93 = arith.mulf %91, %92 : vector<8x1xf32>
    %94 = vector.broadcast %93 : vector<8x1xf32> to vector<8x128xf32>
    %95 = arith.mulf %88, %94 : vector<8x128xf32>
    %96 = arith.addf %56, %95 : vector<8x128xf32>
    %97 = vector.extract_strided_slice %15 {offsets = [0, 256], sizes = [8, 128], strides = [1, 1]} : vector<8x1024xf32> to vector<8x128xf32>
    %cst_36 = arith.constant dense<0.000000e+00> : vector<8x128xf32>
    %98 = tpu.matmul %97, %1, %cst_36 {dimension_numbers = #tpu.dot_dimension_numbers<[1], [0], [0], [1], [0, 0, 1, 1], [], []>} : vector<8x128xf32>, vector<128x128xf32>, vector<8x128xf32> -> vector<8x128xf32>
    %c0_37 = arith.constant 0 : index
    %c0_38 = arith.constant 0 : index
    %99 = vector.load %arg4[%c0_37, %c0_38] : memref<1x128xf32, #tpu.memory_space<vmem>>, vector<1x128xf32>
    %100 = vector.broadcast %99 : vector<1x128xf32> to vector<8x128xf32>
    %101 = arith.addf %98, %100 : vector<8x128xf32>
    %cst_39 = arith.constant dense<0xFF800000> : vector<8xf32>
    %102 = vector.multi_reduction <maximumf>, %101, %cst_39 [1] : vector<8x128xf32> to vector<8xf32>
    %103 = vector.shape_cast %102 : vector<8xf32> to vector<8x1xf32>
    %104 = vector.broadcast %103 : vector<8x1xf32> to vector<8x128xf32>
    %105 = arith.cmpf oge, %101, %104 : vector<8x128xf32>
    %cst_40 = arith.constant 0xFF800000 : f32
    %106 = vector.broadcast %cst_40 : f32 to vector<8x128xf32>
    %107 = arith.select %105, %106, %101 : vector<8x128xi1>, vector<8x128xf32>
    %cst_41 = arith.constant dense<0xFF800000> : vector<8xf32>
    %108 = vector.multi_reduction <maximumf>, %107, %cst_41 [1] : vector<8x128xf32> to vector<8xf32>
    %109 = vector.shape_cast %108 : vector<8xf32> to vector<8x1xf32>
    %110 = vector.broadcast %109 : vector<8x1xf32> to vector<8x128xf32>
    %111 = arith.cmpf oge, %107, %110 : vector<8x128xf32>
    %cst_42 = arith.constant 0xFF800000 : f32
    %112 = vector.broadcast %cst_42 : f32 to vector<8x128xf32>
    %113 = arith.select %111, %112, %107 : vector<8x128xi1>, vector<8x128xf32>
    %cst_43 = arith.constant dense<0xFF800000> : vector<8xf32>
    %114 = vector.multi_reduction <maximumf>, %113, %cst_43 [1] : vector<8x128xf32> to vector<8xf32>
    %115 = vector.shape_cast %114 : vector<8xf32> to vector<8x1xf32>
    %116 = vector.broadcast %115 : vector<8x1xf32> to vector<8x128xf32>
    %117 = arith.cmpf oge, %113, %116 : vector<8x128xf32>
    %cst_44 = arith.constant 0xFF800000 : f32
    %118 = vector.broadcast %cst_44 : f32 to vector<8x128xf32>
    %119 = arith.select %117, %118, %113 : vector<8x128xi1>, vector<8x128xf32>
    %cst_45 = arith.constant dense<0xFF800000> : vector<8xf32>
    %120 = vector.multi_reduction <maximumf>, %119, %cst_45 [1] : vector<8x128xf32> to vector<8xf32>
    %121 = vector.shape_cast %120 : vector<8xf32> to vector<8x1xf32>
    %122 = vector.broadcast %121 : vector<8x1xf32> to vector<8x128xf32>
    %123 = arith.cmpf oge, %101, %122 : vector<8x128xf32>
    %124 = vector.broadcast %103 : vector<8x1xf32> to vector<8x128xf32>
    %125 = arith.subf %101, %124 : vector<8x128xf32>
    %126 = math.exp %125 : vector<8x128xf32>
    %cst_46 = arith.constant 0.000000e+00 : f32
    %127 = vector.broadcast %cst_46 : f32 to vector<8x128xf32>
    %128 = arith.select %123, %126, %127 : vector<8x128xi1>, vector<8x128xf32>
    %cst_47 = arith.constant dense<0.000000e+00> : vector<8xf32>
    %129 = vector.multi_reduction <add>, %128, %cst_47 [1] : vector<8x128xf32> to vector<8xf32>
    %130 = vector.shape_cast %129 : vector<8xf32> to vector<8x1xf32>
    %131 = tpu.reciprocal %130 : vector<8x1xf32> -> vector<8x1xf32>
    %cst_48 = arith.constant 1.250000e-01 : f32
    %132 = vector.broadcast %cst_48 : f32 to vector<8x1xf32>
    %133 = arith.mulf %131, %132 : vector<8x1xf32>
    %134 = vector.broadcast %133 : vector<8x1xf32> to vector<8x128xf32>
    %135 = arith.mulf %128, %134 : vector<8x128xf32>
    %136 = arith.addf %96, %135 : vector<8x128xf32>
    %137 = vector.extract_strided_slice %15 {offsets = [0, 384], sizes = [8, 128], strides = [1, 1]} : vector<8x1024xf32> to vector<8x128xf32>
    %cst_49 = arith.constant dense<0.000000e+00> : vector<8x128xf32>
    %138 = tpu.matmul %137, %1, %cst_49 {dimension_numbers = #tpu.dot_dimension_numbers<[1], [0], [0], [1], [0, 0, 1, 1], [], []>} : vector<8x128xf32>, vector<128x128xf32>, vector<8x128xf32> -> vector<8x128xf32>
    %c0_50 = arith.constant 0 : index
    %c0_51 = arith.constant 0 : index
    %139 = vector.load %arg4[%c0_50, %c0_51] : memref<1x128xf32, #tpu.memory_space<vmem>>, vector<1x128xf32>
    %140 = vector.broadcast %139 : vector<1x128xf32> to vector<8x128xf32>
    %141 = arith.addf %138, %140 : vector<8x128xf32>
    %cst_52 = arith.constant dense<0xFF800000> : vector<8xf32>
    %142 = vector.multi_reduction <maximumf>, %141, %cst_52 [1] : vector<8x128xf32> to vector<8xf32>
    %143 = vector.shape_cast %142 : vector<8xf32> to vector<8x1xf32>
    %144 = vector.broadcast %143 : vector<8x1xf32> to vector<8x128xf32>
    %145 = arith.cmpf oge, %141, %144 : vector<8x128xf32>
    %cst_53 = arith.constant 0xFF800000 : f32
    %146 = vector.broadcast %cst_53 : f32 to vector<8x128xf32>
    %147 = arith.select %145, %146, %141 : vector<8x128xi1>, vector<8x128xf32>
    %cst_54 = arith.constant dense<0xFF800000> : vector<8xf32>
    %148 = vector.multi_reduction <maximumf>, %147, %cst_54 [1] : vector<8x128xf32> to vector<8xf32>
    %149 = vector.shape_cast %148 : vector<8xf32> to vector<8x1xf32>
    %150 = vector.broadcast %149 : vector<8x1xf32> to vector<8x128xf32>
    %151 = arith.cmpf oge, %147, %150 : vector<8x128xf32>
    %cst_55 = arith.constant 0xFF800000 : f32
    %152 = vector.broadcast %cst_55 : f32 to vector<8x128xf32>
    %153 = arith.select %151, %152, %147 : vector<8x128xi1>, vector<8x128xf32>
    %cst_56 = arith.constant dense<0xFF800000> : vector<8xf32>
    %154 = vector.multi_reduction <maximumf>, %153, %cst_56 [1] : vector<8x128xf32> to vector<8xf32>
    %155 = vector.shape_cast %154 : vector<8xf32> to vector<8x1xf32>
    %156 = vector.broadcast %155 : vector<8x1xf32> to vector<8x128xf32>
    %157 = arith.cmpf oge, %153, %156 : vector<8x128xf32>
    %cst_57 = arith.constant 0xFF800000 : f32
    %158 = vector.broadcast %cst_57 : f32 to vector<8x128xf32>
    %159 = arith.select %157, %158, %153 : vector<8x128xi1>, vector<8x128xf32>
    %cst_58 = arith.constant dense<0xFF800000> : vector<8xf32>
    %160 = vector.multi_reduction <maximumf>, %159, %cst_58 [1] : vector<8x128xf32> to vector<8xf32>
    %161 = vector.shape_cast %160 : vector<8xf32> to vector<8x1xf32>
    %162 = vector.broadcast %161 : vector<8x1xf32> to vector<8x128xf32>
    %163 = arith.cmpf oge, %141, %162 : vector<8x128xf32>
    %164 = vector.broadcast %143 : vector<8x1xf32> to vector<8x128xf32>
    %165 = arith.subf %141, %164 : vector<8x128xf32>
    %166 = math.exp %165 : vector<8x128xf32>
    %cst_59 = arith.constant 0.000000e+00 : f32
    %167 = vector.broadcast %cst_59 : f32 to vector<8x128xf32>
    %168 = arith.select %163, %166, %167 : vector<8x128xi1>, vector<8x128xf32>
    %cst_60 = arith.constant dense<0.000000e+00> : vector<8xf32>
    %169 = vector.multi_reduction <add>, %168, %cst_60 [1] : vector<8x128xf32> to vector<8xf32>
    %170 = vector.shape_cast %169 : vector<8xf32> to vector<8x1xf32>
    %171 = tpu.reciprocal %170 : vector<8x1xf32> -> vector<8x1xf32>
    %cst_61 = arith.constant 1.250000e-01 : f32
    %172 = vector.broadcast %cst_61 : f32 to vector<8x1xf32>
    %173 = arith.mulf %171, %172 : vector<8x1xf32>
    %174 = vector.broadcast %173 : vector<8x1xf32> to vector<8x128xf32>
    %175 = arith.mulf %168, %174 : vector<8x128xf32>
    %176 = arith.addf %136, %175 : vector<8x128xf32>
    %177 = vector.extract_strided_slice %15 {offsets = [0, 512], sizes = [8, 128], strides = [1, 1]} : vector<8x1024xf32> to vector<8x128xf32>
    %cst_62 = arith.constant dense<0.000000e+00> : vector<8x128xf32>
    %178 = tpu.matmul %177, %1, %cst_62 {dimension_numbers = #tpu.dot_dimension_numbers<[1], [0], [0], [1], [0, 0, 1, 1], [], []>} : vector<8x128xf32>, vector<128x128xf32>, vector<8x128xf32> -> vector<8x128xf32>
    %c0_63 = arith.constant 0 : index
    %c0_64 = arith.constant 0 : index
    %179 = vector.load %arg4[%c0_63, %c0_64] : memref<1x128xf32, #tpu.memory_space<vmem>>, vector<1x128xf32>
    %180 = vector.broadcast %179 : vector<1x128xf32> to vector<8x128xf32>
    %181 = arith.addf %178, %180 : vector<8x128xf32>
    %cst_65 = arith.constant dense<0xFF800000> : vector<8xf32>
    %182 = vector.multi_reduction <maximumf>, %181, %cst_65 [1] : vector<8x128xf32> to vector<8xf32>
    %183 = vector.shape_cast %182 : vector<8xf32> to vector<8x1xf32>
    %184 = vector.broadcast %183 : vector<8x1xf32> to vector<8x128xf32>
    %185 = arith.cmpf oge, %181, %184 : vector<8x128xf32>
    %cst_66 = arith.constant 0xFF800000 : f32
    %186 = vector.broadcast %cst_66 : f32 to vector<8x128xf32>
    %187 = arith.select %185, %186, %181 : vector<8x128xi1>, vector<8x128xf32>
    %cst_67 = arith.constant dense<0xFF800000> : vector<8xf32>
    %188 = vector.multi_reduction <maximumf>, %187, %cst_67 [1] : vector<8x128xf32> to vector<8xf32>
    %189 = vector.shape_cast %188 : vector<8xf32> to vector<8x1xf32>
    %190 = vector.broadcast %189 : vector<8x1xf32> to vector<8x128xf32>
    %191 = arith.cmpf oge, %187, %190 : vector<8x128xf32>
    %cst_68 = arith.constant 0xFF800000 : f32
    %192 = vector.broadcast %cst_68 : f32 to vector<8x128xf32>
    %193 = arith.select %191, %192, %187 : vector<8x128xi1>, vector<8x128xf32>
    %cst_69 = arith.constant dense<0xFF800000> : vector<8xf32>
    %194 = vector.multi_reduction <maximumf>, %193, %cst_69 [1] : vector<8x128xf32> to vector<8xf32>
    %195 = vector.shape_cast %194 : vector<8xf32> to vector<8x1xf32>
    %196 = vector.broadcast %195 : vector<8x1xf32> to vector<8x128xf32>
    %197 = arith.cmpf oge, %193, %196 : vector<8x128xf32>
    %cst_70 = arith.constant 0xFF800000 : f32
    %198 = vector.broadcast %cst_70 : f32 to vector<8x128xf32>
    %199 = arith.select %197, %198, %193 : vector<8x128xi1>, vector<8x128xf32>
    %cst_71 = arith.constant dense<0xFF800000> : vector<8xf32>
    %200 = vector.multi_reduction <maximumf>, %199, %cst_71 [1] : vector<8x128xf32> to vector<8xf32>
    %201 = vector.shape_cast %200 : vector<8xf32> to vector<8x1xf32>
    %202 = vector.broadcast %201 : vector<8x1xf32> to vector<8x128xf32>
    %203 = arith.cmpf oge, %181, %202 : vector<8x128xf32>
    %204 = vector.broadcast %183 : vector<8x1xf32> to vector<8x128xf32>
    %205 = arith.subf %181, %204 : vector<8x128xf32>
    %206 = math.exp %205 : vector<8x128xf32>
    %cst_72 = arith.constant 0.000000e+00 : f32
    %207 = vector.broadcast %cst_72 : f32 to vector<8x128xf32>
    %208 = arith.select %203, %206, %207 : vector<8x128xi1>, vector<8x128xf32>
    %cst_73 = arith.constant dense<0.000000e+00> : vector<8xf32>
    %209 = vector.multi_reduction <add>, %208, %cst_73 [1] : vector<8x128xf32> to vector<8xf32>
    %210 = vector.shape_cast %209 : vector<8xf32> to vector<8x1xf32>
    %211 = tpu.reciprocal %210 : vector<8x1xf32> -> vector<8x1xf32>
    %cst_74 = arith.constant 1.250000e-01 : f32
    %212 = vector.broadcast %cst_74 : f32 to vector<8x1xf32>
    %213 = arith.mulf %211, %212 : vector<8x1xf32>
    %214 = vector.broadcast %213 : vector<8x1xf32> to vector<8x128xf32>
    %215 = arith.mulf %208, %214 : vector<8x128xf32>
    %216 = arith.addf %176, %215 : vector<8x128xf32>
    %217 = vector.extract_strided_slice %15 {offsets = [0, 640], sizes = [8, 128], strides = [1, 1]} : vector<8x1024xf32> to vector<8x128xf32>
    %cst_75 = arith.constant dense<0.000000e+00> : vector<8x128xf32>
    %218 = tpu.matmul %217, %1, %cst_75 {dimension_numbers = #tpu.dot_dimension_numbers<[1], [0], [0], [1], [0, 0, 1, 1], [], []>} : vector<8x128xf32>, vector<128x128xf32>, vector<8x128xf32> -> vector<8x128xf32>
    %c0_76 = arith.constant 0 : index
    %c0_77 = arith.constant 0 : index
    %219 = vector.load %arg4[%c0_76, %c0_77] : memref<1x128xf32, #tpu.memory_space<vmem>>, vector<1x128xf32>
    %220 = vector.broadcast %219 : vector<1x128xf32> to vector<8x128xf32>
    %221 = arith.addf %218, %220 : vector<8x128xf32>
    %cst_78 = arith.constant dense<0xFF800000> : vector<8xf32>
    %222 = vector.multi_reduction <maximumf>, %221, %cst_78 [1] : vector<8x128xf32> to vector<8xf32>
    %223 = vector.shape_cast %222 : vector<8xf32> to vector<8x1xf32>
    %224 = vector.broadcast %223 : vector<8x1xf32> to vector<8x128xf32>
    %225 = arith.cmpf oge, %221, %224 : vector<8x128xf32>
    %cst_79 = arith.constant 0xFF800000 : f32
    %226 = vector.broadcast %cst_79 : f32 to vector<8x128xf32>
    %227 = arith.select %225, %226, %221 : vector<8x128xi1>, vector<8x128xf32>
    %cst_80 = arith.constant dense<0xFF800000> : vector<8xf32>
    %228 = vector.multi_reduction <maximumf>, %227, %cst_80 [1] : vector<8x128xf32> to vector<8xf32>
    %229 = vector.shape_cast %228 : vector<8xf32> to vector<8x1xf32>
    %230 = vector.broadcast %229 : vector<8x1xf32> to vector<8x128xf32>
    %231 = arith.cmpf oge, %227, %230 : vector<8x128xf32>
    %cst_81 = arith.constant 0xFF800000 : f32
    %232 = vector.broadcast %cst_81 : f32 to vector<8x128xf32>
    %233 = arith.select %231, %232, %227 : vector<8x128xi1>, vector<8x128xf32>
    %cst_82 = arith.constant dense<0xFF800000> : vector<8xf32>
    %234 = vector.multi_reduction <maximumf>, %233, %cst_82 [1] : vector<8x128xf32> to vector<8xf32>
    %235 = vector.shape_cast %234 : vector<8xf32> to vector<8x1xf32>
    %236 = vector.broadcast %235 : vector<8x1xf32> to vector<8x128xf32>
    %237 = arith.cmpf oge, %233, %236 : vector<8x128xf32>
    %cst_83 = arith.constant 0xFF800000 : f32
    %238 = vector.broadcast %cst_83 : f32 to vector<8x128xf32>
    %239 = arith.select %237, %238, %233 : vector<8x128xi1>, vector<8x128xf32>
    %cst_84 = arith.constant dense<0xFF800000> : vector<8xf32>
    %240 = vector.multi_reduction <maximumf>, %239, %cst_84 [1] : vector<8x128xf32> to vector<8xf32>
    %241 = vector.shape_cast %240 : vector<8xf32> to vector<8x1xf32>
    %242 = vector.broadcast %241 : vector<8x1xf32> to vector<8x128xf32>
    %243 = arith.cmpf oge, %221, %242 : vector<8x128xf32>
    %244 = vector.broadcast %223 : vector<8x1xf32> to vector<8x128xf32>
    %245 = arith.subf %221, %244 : vector<8x128xf32>
    %246 = math.exp %245 : vector<8x128xf32>
    %cst_85 = arith.constant 0.000000e+00 : f32
    %247 = vector.broadcast %cst_85 : f32 to vector<8x128xf32>
    %248 = arith.select %243, %246, %247 : vector<8x128xi1>, vector<8x128xf32>
    %cst_86 = arith.constant dense<0.000000e+00> : vector<8xf32>
    %249 = vector.multi_reduction <add>, %248, %cst_86 [1] : vector<8x128xf32> to vector<8xf32>
    %250 = vector.shape_cast %249 : vector<8xf32> to vector<8x1xf32>
    %251 = tpu.reciprocal %250 : vector<8x1xf32> -> vector<8x1xf32>
    %cst_87 = arith.constant 1.250000e-01 : f32
    %252 = vector.broadcast %cst_87 : f32 to vector<8x1xf32>
    %253 = arith.mulf %251, %252 : vector<8x1xf32>
    %254 = vector.broadcast %253 : vector<8x1xf32> to vector<8x128xf32>
    %255 = arith.mulf %248, %254 : vector<8x128xf32>
    %256 = arith.addf %216, %255 : vector<8x128xf32>
    %257 = vector.extract_strided_slice %15 {offsets = [0, 768], sizes = [8, 128], strides = [1, 1]} : vector<8x1024xf32> to vector<8x128xf32>
    %cst_88 = arith.constant dense<0.000000e+00> : vector<8x128xf32>
    %258 = tpu.matmul %257, %1, %cst_88 {dimension_numbers = #tpu.dot_dimension_numbers<[1], [0], [0], [1], [0, 0, 1, 1], [], []>} : vector<8x128xf32>, vector<128x128xf32>, vector<8x128xf32> -> vector<8x128xf32>
    %c0_89 = arith.constant 0 : index
    %c0_90 = arith.constant 0 : index
    %259 = vector.load %arg4[%c0_89, %c0_90] : memref<1x128xf32, #tpu.memory_space<vmem>>, vector<1x128xf32>
    %260 = vector.broadcast %259 : vector<1x128xf32> to vector<8x128xf32>
    %261 = arith.addf %258, %260 : vector<8x128xf32>
    %cst_91 = arith.constant dense<0xFF800000> : vector<8xf32>
    %262 = vector.multi_reduction <maximumf>, %261, %cst_91 [1] : vector<8x128xf32> to vector<8xf32>
    %263 = vector.shape_cast %262 : vector<8xf32> to vector<8x1xf32>
    %264 = vector.broadcast %263 : vector<8x1xf32> to vector<8x128xf32>
    %265 = arith.cmpf oge, %261, %264 : vector<8x128xf32>
    %cst_92 = arith.constant 0xFF800000 : f32
    %266 = vector.broadcast %cst_92 : f32 to vector<8x128xf32>
    %267 = arith.select %265, %266, %261 : vector<8x128xi1>, vector<8x128xf32>
    %cst_93 = arith.constant dense<0xFF800000> : vector<8xf32>
    %268 = vector.multi_reduction <maximumf>, %267, %cst_93 [1] : vector<8x128xf32> to vector<8xf32>
    %269 = vector.shape_cast %268 : vector<8xf32> to vector<8x1xf32>
    %270 = vector.broadcast %269 : vector<8x1xf32> to vector<8x128xf32>
    %271 = arith.cmpf oge, %267, %270 : vector<8x128xf32>
    %cst_94 = arith.constant 0xFF800000 : f32
    %272 = vector.broadcast %cst_94 : f32 to vector<8x128xf32>
    %273 = arith.select %271, %272, %267 : vector<8x128xi1>, vector<8x128xf32>
    %cst_95 = arith.constant dense<0xFF800000> : vector<8xf32>
    %274 = vector.multi_reduction <maximumf>, %273, %cst_95 [1] : vector<8x128xf32> to vector<8xf32>
    %275 = vector.shape_cast %274 : vector<8xf32> to vector<8x1xf32>
    %276 = vector.broadcast %275 : vector<8x1xf32> to vector<8x128xf32>
    %277 = arith.cmpf oge, %273, %276 : vector<8x128xf32>
    %cst_96 = arith.constant 0xFF800000 : f32
    %278 = vector.broadcast %cst_96 : f32 to vector<8x128xf32>
    %279 = arith.select %277, %278, %273 : vector<8x128xi1>, vector<8x128xf32>
    %cst_97 = arith.constant dense<0xFF800000> : vector<8xf32>
    %280 = vector.multi_reduction <maximumf>, %279, %cst_97 [1] : vector<8x128xf32> to vector<8xf32>
    %281 = vector.shape_cast %280 : vector<8xf32> to vector<8x1xf32>
    %282 = vector.broadcast %281 : vector<8x1xf32> to vector<8x128xf32>
    %283 = arith.cmpf oge, %261, %282 : vector<8x128xf32>
    %284 = vector.broadcast %263 : vector<8x1xf32> to vector<8x128xf32>
    %285 = arith.subf %261, %284 : vector<8x128xf32>
    %286 = math.exp %285 : vector<8x128xf32>
    %cst_98 = arith.constant 0.000000e+00 : f32
    %287 = vector.broadcast %cst_98 : f32 to vector<8x128xf32>
    %288 = arith.select %283, %286, %287 : vector<8x128xi1>, vector<8x128xf32>
    %cst_99 = arith.constant dense<0.000000e+00> : vector<8xf32>
    %289 = vector.multi_reduction <add>, %288, %cst_99 [1] : vector<8x128xf32> to vector<8xf32>
    %290 = vector.shape_cast %289 : vector<8xf32> to vector<8x1xf32>
    %291 = tpu.reciprocal %290 : vector<8x1xf32> -> vector<8x1xf32>
    %cst_100 = arith.constant 1.250000e-01 : f32
    %292 = vector.broadcast %cst_100 : f32 to vector<8x1xf32>
    %293 = arith.mulf %291, %292 : vector<8x1xf32>
    %294 = vector.broadcast %293 : vector<8x1xf32> to vector<8x128xf32>
    %295 = arith.mulf %288, %294 : vector<8x128xf32>
    %296 = arith.addf %256, %295 : vector<8x128xf32>
    %297 = vector.extract_strided_slice %15 {offsets = [0, 896], sizes = [8, 128], strides = [1, 1]} : vector<8x1024xf32> to vector<8x128xf32>
    %cst_101 = arith.constant dense<0.000000e+00> : vector<8x128xf32>
    %298 = tpu.matmul %297, %1, %cst_101 {dimension_numbers = #tpu.dot_dimension_numbers<[1], [0], [0], [1], [0, 0, 1, 1], [], []>} : vector<8x128xf32>, vector<128x128xf32>, vector<8x128xf32> -> vector<8x128xf32>
    %c0_102 = arith.constant 0 : index
    %c0_103 = arith.constant 0 : index
    %299 = vector.load %arg4[%c0_102, %c0_103] : memref<1x128xf32, #tpu.memory_space<vmem>>, vector<1x128xf32>
    %300 = vector.broadcast %299 : vector<1x128xf32> to vector<8x128xf32>
    %301 = arith.addf %298, %300 : vector<8x128xf32>
    %cst_104 = arith.constant dense<0xFF800000> : vector<8xf32>
    %302 = vector.multi_reduction <maximumf>, %301, %cst_104 [1] : vector<8x128xf32> to vector<8xf32>
    %303 = vector.shape_cast %302 : vector<8xf32> to vector<8x1xf32>
    %304 = vector.broadcast %303 : vector<8x1xf32> to vector<8x128xf32>
    %305 = arith.cmpf oge, %301, %304 : vector<8x128xf32>
    %cst_105 = arith.constant 0xFF800000 : f32
    %306 = vector.broadcast %cst_105 : f32 to vector<8x128xf32>
    %307 = arith.select %305, %306, %301 : vector<8x128xi1>, vector<8x128xf32>
    %cst_106 = arith.constant dense<0xFF800000> : vector<8xf32>
    %308 = vector.multi_reduction <maximumf>, %307, %cst_106 [1] : vector<8x128xf32> to vector<8xf32>
    %309 = vector.shape_cast %308 : vector<8xf32> to vector<8x1xf32>
    %310 = vector.broadcast %309 : vector<8x1xf32> to vector<8x128xf32>
    %311 = arith.cmpf oge, %307, %310 : vector<8x128xf32>
    %cst_107 = arith.constant 0xFF800000 : f32
    %312 = vector.broadcast %cst_107 : f32 to vector<8x128xf32>
    %313 = arith.select %311, %312, %307 : vector<8x128xi1>, vector<8x128xf32>
    %cst_108 = arith.constant dense<0xFF800000> : vector<8xf32>
    %314 = vector.multi_reduction <maximumf>, %313, %cst_108 [1] : vector<8x128xf32> to vector<8xf32>
    %315 = vector.shape_cast %314 : vector<8xf32> to vector<8x1xf32>
    %316 = vector.broadcast %315 : vector<8x1xf32> to vector<8x128xf32>
    %317 = arith.cmpf oge, %313, %316 : vector<8x128xf32>
    %cst_109 = arith.constant 0xFF800000 : f32
    %318 = vector.broadcast %cst_109 : f32 to vector<8x128xf32>
    %319 = arith.select %317, %318, %313 : vector<8x128xi1>, vector<8x128xf32>
    %cst_110 = arith.constant dense<0xFF800000> : vector<8xf32>
    %320 = vector.multi_reduction <maximumf>, %319, %cst_110 [1] : vector<8x128xf32> to vector<8xf32>
    %321 = vector.shape_cast %320 : vector<8xf32> to vector<8x1xf32>
    %322 = vector.broadcast %321 : vector<8x1xf32> to vector<8x128xf32>
    %323 = arith.cmpf oge, %301, %322 : vector<8x128xf32>
    %324 = vector.broadcast %303 : vector<8x1xf32> to vector<8x128xf32>
    %325 = arith.subf %301, %324 : vector<8x128xf32>
    %326 = math.exp %325 : vector<8x128xf32>
    %cst_111 = arith.constant 0.000000e+00 : f32
    %327 = vector.broadcast %cst_111 : f32 to vector<8x128xf32>
    %328 = arith.select %323, %326, %327 : vector<8x128xi1>, vector<8x128xf32>
    %cst_112 = arith.constant dense<0.000000e+00> : vector<8xf32>
    %329 = vector.multi_reduction <add>, %328, %cst_112 [1] : vector<8x128xf32> to vector<8xf32>
    %330 = vector.shape_cast %329 : vector<8xf32> to vector<8x1xf32>
    %331 = tpu.reciprocal %330 : vector<8x1xf32> -> vector<8x1xf32>
    %cst_113 = arith.constant 1.250000e-01 : f32
    %332 = vector.broadcast %cst_113 : f32 to vector<8x1xf32>
    %333 = arith.mulf %331, %332 : vector<8x1xf32>
    %334 = vector.broadcast %333 : vector<8x1xf32> to vector<8x128xf32>
    %335 = arith.mulf %328, %334 : vector<8x128xf32>
    %336 = arith.addf %296, %335 : vector<8x128xf32>
    %c0_114 = arith.constant 0 : index
    %c0_115 = arith.constant 0 : index
    %337 = vector.load %arg5[%c0_114, %c0_115] : memref<8x128xf32, #tpu.memory_space<vmem>>, vector<8x128xf32>
    tpu.vector_store %arg5[%c0_114, %c0_115], %336 {strides = array<i32>} : memref<8x128xf32, #tpu.memory_space<vmem>>, vector<8x128xf32>,
    return
  }
  func.func @transform_0(%arg0: i32) -> (i32, i32) {
    %c0_i32 = arith.constant 0 : i32
    %c0_i32_0 = arith.constant 0 : i32
    return %arg0, %c0_i32 : i32, i32
  }
  func.func @transform_1(%arg0: i32) -> (i32, i32) {
    %c0_i32 = arith.constant 0 : i32
    %c0_i32_0 = arith.constant 0 : i32
    %c0_i32_1 = arith.constant 0 : i32
    return %c0_i32, %c0_i32_0 : i32, i32
  }
  func.func @transform_2(%arg0: i32) -> (i32, i32) {
    %c0_i32 = arith.constant 0 : i32
    %c0_i32_0 = arith.constant 0 : i32
    %c0_i32_1 = arith.constant 0 : i32
    return %c0_i32, %c0_i32_0 : i32, i32
  }
  func.func @transform_3(%arg0: i32) -> (i32, i32) {
    %c0_i32 = arith.constant 0 : i32
    %c0_i32_0 = arith.constant 0 : i32
    %c0_i32_1 = arith.constant 0 : i32
    return %c0_i32, %c0_i32_0 : i32, i32
  }
  func.func @transform_4(%arg0: i32) -> (i32, i32) {
    %c0_i32 = arith.constant 0 : i32
    %c0_i32_0 = arith.constant 0 : i32
    return %arg0, %c0_i32 : i32, i32
  }
}

</mosaic_0001>

<bundles_post_ra>
// kernel: tpu_custom_call.1
= control target key start
LH: loop header
LB: loop body
LE: loop exit
PB: predicated region body
PF: predicated region fallthrough
CT: control target
= control target key end

     0   :  { %9 = vsyncpa [#allocation3], 0  ;;  %s2008_s0 = inlined_call_operand.hbm [shape: f32[16,128], index: 0, kind: input, shape index: {}]   ;;  %s2009_s1 = inlined_call_operand.hbm [shape: f32[128,128], index: 1, kind: input, shape index: {}]   ;;  %s2010_s2 = inlined_call_operand.hbm [shape: f32[128,1024], index: 2, kind: input, shape index: {}]   ;;  %s2011_s3 = inlined_call_operand.vmem [shape: f32[1,128], index: 3, kind: input, shape index: {}]   ;;  %s2012_s4 = inlined_call_operand.hbm [shape: f32[16,128], index: 4, kind: output, shape index: {}]  }
   0x1   :  { %11 = vsyncpa [#allocation3 + $0x1], 0 }
   0x2   :  { %12 = vsyncpa [#allocation6], 0 }
   0x3   :  { %13 = vsyncpa [#allocation4], 0 }
   0x4   :  { %15 = vsyncpa [#allocation4 + $0x1], 0  ;;  %s1477_s15 = smov 0   ;;  %s1479_s16 = smov 0  }
   0x5   :  { %s1481_s17 = smov 0   ;;  %s1483_s18 = smov 0  }
   0x6 LB: > { %s152_s21 = sshll.u32 %s2009_s1, 4  ;;  %s1501_s22 = sadd.s32 4294967295, %s1444_s18   ;;  %s1444_s18 = sphi %s1483_s18, %s2037_s18   ;;  %s1440_s17 = sphi %s1481_s17, %s2036_s17   ;;  %s1436_s16 = sphi %s1479_s16, %s2035_s16   ;;  %s1432_s15 = sphi %s1477_s15, %s2034_s15   ;;  %s153_s21 = int_to_ptr.hbm [resolvable:$true] %s152_s21 }
   0x7   : > { %p1161_p0 = scmp.ge.s32.totalorder %s1444_s18, 1  ;;  %p42_p1 = scmp.eq.s32.totalorder %s1501_s22, 0 }
   0x8   : > { %p141_p2 = scmp.lt.s32.totalorder %s1444_s18, 3  ;;  %s1446_s24 = smov [#allocation5]  }
   0x9   : > { %s154_s25 = sshll.u32 %s1446_s24, 4  ;;  %s166_s28 = sshll.u32 %s2010_s2, 4  ;;  %s155_s25 = int_to_ptr.vmem [resolvable:$true] %s154_s25  ;;  %s167_s28 = int_to_ptr.hbm [resolvable:$true] %s166_s28 }
   0xa   : > { %p1506_p3 = pnand %p1161_p0, %p141_p2  ;;  %s1447_s29 = smov [#allocation7]  }
   0xb   : > { %s168_s30 = sshll.u32 %s1447_s29, 4  ;;  %s1448_s5 = smov 128   ;;  %s169_s30 = int_to_ptr.vmem [resolvable:$true] %s168_s30 }
   0xc   : > { %p1188_p4 = pneg %p1506_p3  ;;  %s1449_s6 = smov 8  }
   0xd   : > { %s1450_s7 = smov 1024   ;;  %s1451_s8 = smov 64  }
   0xe   : > { %p1189_p6 = pnand %p1188_p4, %p42_p1  ;;  %s1160_s9 = sadd.s32 4294967294, %s1444_s18  }
   0xf   : > { %s1520_s10 = sadd.s32 1, %s1444_s18   ;;  %s28_s12 = sadd.s32 1, %s1440_s17 }
  0x10   : > { %1191 = dma.hbm_to_vmem [thread:$0]  (!%p1189_p6), %s153_s21, 2048, %s155_s25, [#allocation6], %s1448_s5, %s1448_s5, %s1449_s6  }
  0x11   : > { %1194 = dma.hbm_to_vmem [thread:$0]  (!%p1189_p6), %s167_s28, 16384, %s169_s30, [#allocation6], %s1450_s7, %s1450_s7, %s1451_s8  }
  0x12   : > { %s25_s11 = ssub.s32 %s1444_s18, %s1520_s10  ;;  %p35_p8 = scmp.ne.s32.totalorder %s1440_s17, %s1436_s16 }
  0x13   : > { %p26_p7 = scmp.eq.s32.totalorder %s25_s11, 0  ;;  %p36_p9 = scmp.eq.s32.totalorder %s1444_s18, 0 }
  0x14   : > { %p41_p10 = scmp.ne.s32.totalorder %s1436_s16, %s1432_s15  ;;  %p128_p13 = scmp.eq.s32.totalorder %s1501_s22, 1 }
  0x15   : > { %s1531_s13 = scalar_select %p26_p7, %s1440_s17, %s28_s12  }
  0x16   : > { %p1533_p11 = por %p36_p9, %p35_p8  ;;  %p1539_p12 = por %p42_p1, %p41_p10 }
  0x17   : > { %p134_p0 = scmp.eq.s32.totalorder %s1160_s9, 1  ;;  %p1205_p2 = scmp.lt.s32.totalorder %s1444_s18, 2 }
  0x18   : > { %s185_s20 = sand.u32 1, %s1440_s17   ;;  %p1546_p4 = por %p128_p13, %p35_p8 }
  0x19   : > { %p1550_p6 = por %p134_p0, %p41_p10  ;;  %s1165_s25 = sshll.u32 %s185_s20, 3 }
  0x1a   : > { %s1166_s26 = sshll.u32 %s1444_s18, 3  ;;  %s189_s30 = scalar_lea.vmem [#allocation2], %s1165_s25 }
  0x1b   : > { %s193_s29 = scalar_lea.hbm %s2008_s0, %s1166_s26  ;;  %s197_s5 = sshll.u32 %s189_s30, 4  ;;  %s198_s5 = int_to_ptr.vmem [resolvable:$true] %s197_s5 }
  0x1c   : > { %s195_s6 = sshll.u32 %s193_s29, 4  ;;  %p1560_p7 = pnand %p1205_p2, %p1533_p11  ;;  %s196_s6 = int_to_ptr.hbm [resolvable:$true] %s195_s6 }
  0x1d   : > { %s186_s8 = scalar_lea.sflag [#allocation3], %s185_s20  ;;  %s1344_s9 = sshra.s32 %s196_s6, 4  ;;  %s1345_s9 = int_to_ptr.hbm [resolvable:$true] %s1344_s9 }
  0x1e   : > { %s1346_s11 = scalar_lea.hbm %s1345_s9, 8  ;;  %p1348_p9 = pneg %p1560_p7 }
  0x1f   : > { %p1347_p8 = scmp.ne.s32.totalorder %s1345_s9, %s1346_s11  ;;  %s1351_s26 = scalar_lea.hbm %s2008_s0, 16 }
  0x20   : > { %p1352_p11 = scmp.lt.s32.totalorder %s1345_s9, %s2008_s0  ;;  %p1353_p0 = scmp.lt.s32.totalorder %s1351_s26, %s1346_s11 }
  0x21   : > { %p1349_p10 = pnand %p1348_p9, %p1347_p8 }
  0x22   : > { %p1354_p2 = por %p1353_p0, %p1352_p11 }
  0x23   : > { %p1350_p13 = pneg %p1349_p10 }
  0x25   : > { %p1355_p5 = pnand %p1354_p2, %p1350_p13 }
  0x27   : > { %1358 = shalt.err (!%p1355_p5)
}
  0x28   : > { %1198 = dma.hbm_to_vmem [thread:$0]  (!%p1560_p7), %s196_s6, 128, %s198_s5, %s186_s8  }
  0x29   : > { %206 = sbr.rel (%p1506_p3) target bundleno = 1104 (0x450), region = 36  ;;  %s1577_s20 = sand.u32 (!%p1506_p3), 1, %s1436_s16  }
  0x2a   : > { %s1168_s28 = sshll.u32 (!%p1506_p3), %s1577_s20, 3  ;;  %s209_s29 = scalar_lea.sflag (!%p1506_p3), [#allocation3], %s1577_s20 }
  0x2b   : > { %s212_s30 = scalar_lea.vmem (!%p1506_p3), [#allocation2], %s1168_s28 }
  0x2e   : > { %1419 = dma.done.wait (%p1539_p12), %s209_s29, 128  }
  0x2f   : > { %1421 = vsyncadd (%p1539_p12), %s209_s29, 4294967168 }
  0x30   : > { %1423 = dma.done.wait (%p42_p1), [#allocation6], 18432  }
  0x31   : > { %1425 = vsyncadd (%p42_p1), [#allocation6], 4294948864  ;;  %v1591_v0 = vld [vmem:[%s212_s30] sm:$0xff]  ;;  %v385_v1 = vld [vmem:[#allocation7 + $0x3c0] sm:$0xff]  ;;  %s1173_s5 = sshll.u32 %s1501_s22, 3  ;;  %s247_s9 = scalar_lea.vmem [#allocation8], %s1168_s28 }
  0x32   : > { %v386_v2 = vld [vmem:[#allocation7 + $0x3c8] sm:$0xff]  ;;  %v393_v3 = vmul.f32 %v1591_v0, %v1591_v0  ;;  %426 = vmatpush.msra.mxu0 %v385_v1  ;;  %v387_v4 = vld [vmem:[#allocation7 + $0x3d0] sm:$0xff]  ;;  %v388_v5 = vld [vmem:[#allocation7 + $0x3d8] sm:$0xff]  ;;  %s1066_s8 = scalar_lea.hbm %s2012_s4, %s1173_s5  ;;  %s1068_s22 = sshll.u32 %s247_s9, 4  ;;  %s1069_s22 = int_to_ptr.vmem [resolvable:$true] %s1068_s22 }
  0x33   : > { %446 = vmatpush.msra.mxu1 %v386_v2  ;;  %v377_v6 = vld [vmem:[#allocation7 + $0x380] sm:$0xff]  ;;  %466 = vmatpush.msra.mxu2 %v387_v4  ;;  %v378_v7 = vld [vmem:[#allocation7 + $0x388] sm:$0xff]  ;;  %v379_v8 = vld [vmem:[#allocation7 + $0x390] sm:$0xff]  ;;  %s1070_s11 = sshll.u32 %s1066_s8, 4  ;;  %s1056_s12 = scalar_lea.sflag [#allocation4], %s1577_s20  ;;  %s1071_s11 = int_to_ptr.hbm [resolvable:$true] %s1070_s11 }
  0x34   : > { %486 = vmatpush.msra.mxu3 %v388_v5  ;;  %v380_v9 = vld [vmem:[#allocation7 + $0x398] sm:$0xff]  ;;  %394 = vadd.xlane.f32.xlu0 %v393_v3  ;;  %v369_v10 = vld [vmem:[#allocation7 + $0x340] sm:$0xff]  ;;  %v370_v11 = vld [vmem:[#allocation7 + $0x348] sm:$0xff]  ;;  %s1388_s25 = sshra.s32 %s1071_s11, 4  ;;  %s1394_s28 = scalar_lea.hbm %s2012_s4, 16  ;;  %s1389_s25 = int_to_ptr.hbm [resolvable:$true] %s1388_s25 }
  0x35   : > { %427 = vmatpush.msra.mxu0 %v377_v6  ;;  %v371_v12 = vld [vmem:[#allocation7 + $0x350] sm:$0xff]  ;;  %447 = vmatpush.msra.mxu1 %v378_v7  ;;  %v372_v13 = vld [vmem:[#allocation7 + $0x358] sm:$0xff]  ;;  %v361_v14 = vld [vmem:[#allocation7 + $0x300] sm:$0xff]  ;;  %s1390_s26 = scalar_lea.hbm %s1389_s25, 8  ;;  %p1395_p12 = scmp.lt.s32.totalorder %s1389_s25, %s2012_s4 }
  0x36   : > { %467 = vmatpush.msra.mxu2 %v379_v8  ;;  %487 = vmatpush.msra.mxu3 %v380_v9  ;;  %v362_v15 = vld [vmem:[#allocation7 + $0x308] sm:$0xff]  ;;  %v363_v16 = vld [vmem:[#allocation7 + $0x310] sm:$0xff]  ;;  %v364_v17 = vld [vmem:[#allocation7 + $0x318] sm:$0xff]  ;;  %p1391_p1 = scmp.ne.s32.totalorder %s1389_s25, %s1390_s26  ;;  %p1396_p7 = scmp.lt.s32.totalorder %s1394_s28, %s1390_s26 }
  0x37   : > { %428 = vmatpush.msra.mxu0 %v369_v10  ;;  %448 = vmatpush.msra.mxu1 %v370_v11  ;;  %v353_v18 = vld [vmem:[#allocation7 + $0x2c0] sm:$0xff]  ;;  %v354_v19 = vld [vmem:[#allocation7 + $0x2c8] sm:$0xff]  ;;  %v355_v20 = vld [vmem:[#allocation7 + $0x2d0] sm:$0xff] }
  0x38   : > { %468 = vmatpush.msra.mxu2 %v371_v12  ;;  %488 = vmatpush.msra.mxu3 %v372_v13  ;;  %v356_v21 = vld [vmem:[#allocation7 + $0x2d8] sm:$0xff]  ;;  %v345_v22 = vld [vmem:[#allocation7 + $0x280] sm:$0xff]  ;;  %v346_v23 = vld [vmem:[#allocation7 + $0x288] sm:$0xff]  ;;  %p1392_p3 = pnand %p1391_p1, %p1546_p4  ;;  %p1397_p8 = por %p1396_p7, %p1395_p12 }
  0x39   : > { %429 = vmatpush.msra.mxu0 %v361_v14  ;;  %449 = vmatpush.msra.mxu1 %v362_v15  ;;  %v347_v24 = vld [vmem:[#allocation7 + $0x290] sm:$0xff]  ;;  %v348_v25 = vld [vmem:[#allocation7 + $0x298] sm:$0xff]  ;;  %v337_v26 = vld [vmem:[#allocation7 + $0x240] sm:$0xff] }
  0x3a   : > { %469 = vmatpush.msra.mxu2 %v363_v16  ;;  %489 = vmatpush.msra.mxu3 %v364_v17  ;;  %v338_v27 = vld [vmem:[#allocation7 + $0x248] sm:$0xff]  ;;  %v339_v28 = vld [vmem:[#allocation7 + $0x250] sm:$0xff]  ;;  %v340_v29 = vld [vmem:[#allocation7 + $0x258] sm:$0xff]  ;;  %p1393_p5 = pneg %p1392_p3 }
  0x3b   : > { %430 = vmatpush.msra.mxu0 %v353_v18  ;;  %450 = vmatpush.msra.mxu1 %v354_v19  ;;  %v329_v30 = vld [vmem:[#allocation7 + $0x200] sm:$0xff]  ;;  %v330_v31 = vld [vmem:[#allocation7 + $0x208] sm:$0xff]  ;;  %v331_v32 = vld [vmem:[#allocation7 + $0x210] sm:$0xff] }
  0x3c   : > { %470 = vmatpush.msra.mxu2 %v355_v20  ;;  %490 = vmatpush.msra.mxu3 %v356_v21  ;;  %v332_v33 = vld [vmem:[#allocation7 + $0x218] sm:$0xff]  ;;  %v321_v34 = vld [vmem:[#allocation7 + $0x1c0] sm:$0xff]  ;;  %v322_v35 = vld [vmem:[#allocation7 + $0x1c8] sm:$0xff]  ;;  %p1398_p9 = pnand %p1397_p8, %p1393_p5 }
  0x3d   : > { %431 = vmatpush.msra.mxu0 %v345_v22  ;;  %451 = vmatpush.msra.mxu1 %v346_v23  ;;  %v323_v36 = vld [vmem:[#allocation7 + $0x1d0] sm:$0xff]  ;;  %v324_v37 = vld [vmem:[#allocation7 + $0x1d8] sm:$0xff]  ;;  %v313_v38 = vld [vmem:[#allocation7 + $0x180] sm:$0xff] }
  0x3e   : > { %471 = vmatpush.msra.mxu2 %v347_v24  ;;  %491 = vmatpush.msra.mxu3 %v348_v25  ;;  %v314_v39 = vld [vmem:[#allocation7 + $0x188] sm:$0xff]  ;;  %v315_v40 = vld [vmem:[#allocation7 + $0x190] sm:$0xff]  ;;  %v316_v41 = vld [vmem:[#allocation7 + $0x198] sm:$0xff] }
  0x3f   : > { %432 = vmatpush.msra.mxu0 %v337_v26  ;;  %452 = vmatpush.msra.mxu1 %v338_v27  ;;  %v305_v42 = vld [vmem:[#allocation7 + $0x140] sm:$0xff]  ;;  %v306_v43 = vld [vmem:[#allocation7 + $0x148] sm:$0xff]  ;;  %v307_v44 = vld [vmem:[#allocation7 + $0x150] sm:$0xff] }
  0x40   : > { %472 = vmatpush.msra.mxu2 %v339_v28  ;;  %492 = vmatpush.msra.mxu3 %v340_v29  ;;  %v308_v45 = vld [vmem:[#allocation7 + $0x158] sm:$0xff]  ;;  %v297_v46 = vld [vmem:[#allocation7 + $0x100] sm:$0xff]  ;;  %v298_v47 = vld [vmem:[#allocation7 + $0x108] sm:$0xff] }
  0x41   : > { %433 = vmatpush.msra.mxu0 %v329_v30  ;;  %453 = vmatpush.msra.mxu1 %v330_v31  ;;  %v299_v48 = vld [vmem:[#allocation7 + $0x110] sm:$0xff]  ;;  %v300_v49 = vld [vmem:[#allocation7 + $0x118] sm:$0xff]  ;;  %v289_v50 = vld [vmem:[#allocation7 + $0xc0] sm:$0xff] }
  0x42   : > { %473 = vmatpush.msra.mxu2 %v331_v32  ;;  %493 = vmatpush.msra.mxu3 %v332_v33  ;;  %v290_v51 = vld [vmem:[#allocation7 + $0xc8] sm:$0xff]  ;;  %v291_v52 = vld [vmem:[#allocation7 + $0xd0] sm:$0xff]  ;;  %v292_v53 = vld [vmem:[#allocation7 + $0xd8] sm:$0xff] }
  0x43   : > { %434 = vmatpush.msra.mxu0 %v321_v34  ;;  %454 = vmatpush.msra.mxu1 %v322_v35  ;;  %v281_v54 = vld [vmem:[#allocation7 + $0x80] sm:$0xff]  ;;  %v282_v55 = vld [vmem:[#allocation7 + $0x88] sm:$0xff]  ;;  %v283_v56 = vld [vmem:[#allocation7 + $0x90] sm:$0xff] }
  0x44   : > { %474 = vmatpush.msra.mxu2 %v323_v36  ;;  %494 = vmatpush.msra.mxu3 %v324_v37  ;;  %v284_v57 = vld [vmem:[#allocation7 + $0x98] sm:$0xff]  ;;  %v273_v58 = vld [vmem:[#allocation7 + $0x40] sm:$0xff]  ;;  %v274_v59 = vld [vmem:[#allocation7 + $0x48] sm:$0xff] }
  0x45   : > { %435 = vmatpush.msra.mxu0 %v313_v38  ;;  %455 = vmatpush.msra.mxu1 %v314_v39  ;;  %v275_v60 = vld [vmem:[#allocation7 + $0x50] sm:$0xff]  ;;  %v276_v61 = vld [vmem:[#allocation7 + $0x58] sm:$0xff]  ;;  %v265_v62 = vld [vmem:[#allocation7] sm:$0xff] }
  0x46   : > { %475 = vmatpush.msra.mxu2 %v315_v40  ;;  %495 = vmatpush.msra.mxu3 %v316_v41  ;;  %v266_v63 = vld [vmem:[#allocation7 + $0x8] sm:$0xff]  ;;  %v267_v1 = vld [vmem:[#allocation7 + $0x10] sm:$0xff]  ;;  %v268_v2 = vld [vmem:[#allocation7 + $0x18] sm:$0xff] }
  0x47   : > { %436 = vmatpush.msra.mxu0 %v305_v42  ;;  %456 = vmatpush.msra.mxu1 %v306_v43  ;;  %v389_v3 = vld [vmem:[#allocation7 + $0x3e0] sm:$0xff]  ;;  %v390_v4 = vld [vmem:[#allocation7 + $0x3e8] sm:$0xff]  ;;  %v391_v5 = vld [vmem:[#allocation7 + $0x3f0] sm:$0xff] }
  0x48   : > { %476 = vmatpush.msra.mxu2 %v307_v44  ;;  %496 = vmatpush.msra.mxu3 %v308_v45  ;;  %v392_v6 = vld [vmem:[#allocation7 + $0x3f8] sm:$0xff]  ;;  %v381_v7 = vld [vmem:[#allocation7 + $0x3a0] sm:$0xff]  ;;  %v382_v8 = vld [vmem:[#allocation7 + $0x3a8] sm:$0xff] }
  0x49   : > { %437 = vmatpush.msra.mxu0 %v297_v46  ;;  %457 = vmatpush.msra.mxu1 %v298_v47  ;;  %v383_v9 = vld [vmem:[#allocation7 + $0x3b0] sm:$0xff]  ;;  %v384_v10 = vld [vmem:[#allocation7 + $0x3b8] sm:$0xff]  ;;  %v373_v11 = vld [vmem:[#allocation7 + $0x360] sm:$0xff] }
  0x4a   : > { %477 = vmatpush.msra.mxu2 %v299_v48  ;;  %497 = vmatpush.msra.mxu3 %v300_v49  ;;  %v374_v12 = vld [vmem:[#allocation7 + $0x368] sm:$0xff]  ;;  %v375_v13 = vld [vmem:[#allocation7 + $0x370] sm:$0xff]  ;;  %v376_v14 = vld [vmem:[#allocation7 + $0x378] sm:$0xff] }
  0x4b   : > { %438 = vmatpush.msra.mxu0 %v289_v50  ;;  %458 = vmatpush.msra.mxu1 %v290_v51  ;;  %v365_v15 = vld [vmem:[#allocation7 + $0x320] sm:$0xff]  ;;  %v366_v16 = vld [vmem:[#allocation7 + $0x328] sm:$0xff]  ;;  %v367_v17 = vld [vmem:[#allocation7 + $0x330] sm:$0xff] }
  0x4c   : > { %478 = vmatpush.msra.mxu2 %v291_v52  ;;  %498 = vmatpush.msra.mxu3 %v292_v53  ;;  %v368_v18 = vld [vmem:[#allocation7 + $0x338] sm:$0xff]  ;;  %v357_v19 = vld [vmem:[#allocation7 + $0x2e0] sm:$0xff]  ;;  %v358_v20 = vld [vmem:[#allocation7 + $0x2e8] sm:$0xff] }
  0x4d   : > { %439 = vmatpush.msra.mxu0 %v281_v54  ;;  %459 = vmatpush.msra.mxu1 %v282_v55  ;;  %v359_v21 = vld [vmem:[#allocation7 + $0x2f0] sm:$0xff]  ;;  %v360_v22 = vld [vmem:[#allocation7 + $0x2f8] sm:$0xff]  ;;  %v349_v23 = vld [vmem:[#allocation7 + $0x2a0] sm:$0xff] }
  0x4e   : > { %479 = vmatpush.msra.mxu2 %v283_v56  ;;  %499 = vmatpush.msra.mxu3 %v284_v57  ;;  %v350_v24 = vld [vmem:[#allocation7 + $0x2a8] sm:$0xff]  ;;  %v351_v25 = vld [vmem:[#allocation7 + $0x2b0] sm:$0xff]  ;;  %v352_v26 = vld [vmem:[#allocation7 + $0x2b8] sm:$0xff] }
  0x4f   : > { %440 = vmatpush.msra.mxu0 %v273_v58  ;;  %460 = vmatpush.msra.mxu1 %v274_v59  ;;  %v341_v27 = vld [vmem:[#allocation7 + $0x260] sm:$0xff]  ;;  %v342_v28 = vld [vmem:[#allocation7 + $0x268] sm:$0xff]  ;;  %v343_v29 = vld [vmem:[#allocation7 + $0x270] sm:$0xff] }
  0x50   : > { %480 = vmatpush.msra.mxu2 %v275_v60  ;;  %500 = vmatpush.msra.mxu3 %v276_v61  ;;  %v344_v31 = vld [vmem:[#allocation7 + $0x278] sm:$0xff]  ;;  %v333_v32 = vld [vmem:[#allocation7 + $0x220] sm:$0xff]  ;;  %v334_v33 = vld [vmem:[#allocation7 + $0x228] sm:$0xff] }
  0x51   : > { %441 = vmatpush.msra.mxu0 %v265_v62  ;;  %461 = vmatpush.msra.mxu1 %v266_v63  ;;  %v335_v34 = vld [vmem:[#allocation7 + $0x230] sm:$0xff]  ;;  %v336_v35 = vld [vmem:[#allocation7 + $0x238] sm:$0xff]  ;;  %v325_v36 = vld [vmem:[#allocation7 + $0x1e0] sm:$0xff] }
  0x52   : > { %481 = vmatpush.msra.mxu2 %v267_v1  ;;  %501 = vmatpush.msra.mxu3 %v268_v2  ;;  %v326_v37 = vld [vmem:[#allocation7 + $0x1e8] sm:$0xff]  ;;  %v327_v38 = vld [vmem:[#allocation7 + $0x1f0] sm:$0xff]  ;;  %v328_v39 = vld [vmem:[#allocation7 + $0x1f8] sm:$0xff] }
  0x53   : > { %506 = vmatpush.msrb.mxu0 %v389_v3  ;;  %526 = vmatpush.msrb.mxu1 %v390_v4  ;;  %v317_v40 = vld [vmem:[#allocation7 + $0x1a0] sm:$0xff]  ;;  %v318_v41 = vld [vmem:[#allocation7 + $0x1a8] sm:$0xff]  ;;  %v319_v42 = vld [vmem:[#allocation7 + $0x1b0] sm:$0xff] }
  0x54   : > { %546 = vmatpush.msrb.mxu2 %v391_v5  ;;  %566 = vmatpush.msrb.mxu3 %v392_v6  ;;  %v320_v43 = vld [vmem:[#allocation7 + $0x1b8] sm:$0xff]  ;;  %v309_v45 = vld [vmem:[#allocation7 + $0x160] sm:$0xff]  ;;  %v310_v46 = vld [vmem:[#allocation7 + $0x168] sm:$0xff] }
  0x55   : > { %507 = vmatpush.msrb.mxu0 %v381_v7  ;;  %527 = vmatpush.msrb.mxu1 %v382_v8  ;;  %v311_v47 = vld [vmem:[#allocation7 + $0x170] sm:$0xff]  ;;  %v312_v49 = vld [vmem:[#allocation7 + $0x178] sm:$0xff]  ;;  %v301_v50 = vld [vmem:[#allocation7 + $0x120] sm:$0xff] }
  0x56   : > { %547 = vmatpush.msrb.mxu2 %v383_v9  ;;  %567 = vmatpush.msrb.mxu3 %v384_v10  ;;  %v302_v51 = vld [vmem:[#allocation7 + $0x128] sm:$0xff]  ;;  %v303_v52 = vld [vmem:[#allocation7 + $0x130] sm:$0xff]  ;;  %v304_v53 = vld [vmem:[#allocation7 + $0x138] sm:$0xff] }
  0x57   : > { %508 = vmatpush.msrb.mxu0 %v373_v11  ;;  %528 = vmatpush.msrb.mxu1 %v374_v12  ;;  %v293_v55 = vld [vmem:[#allocation7 + $0xe0] sm:$0xff]  ;;  %v294_v56 = vld [vmem:[#allocation7 + $0xe8] sm:$0xff]  ;;  %v295_v57 = vld [vmem:[#allocation7 + $0xf0] sm:$0xff] }
  0x58   : > { %548 = vmatpush.msrb.mxu2 %v375_v13  ;;  %568 = vmatpush.msrb.mxu3 %v376_v14  ;;  %v296_v59 = vld [vmem:[#allocation7 + $0xf8] sm:$0xff]  ;;  %v285_v60 = vld [vmem:[#allocation7 + $0xa0] sm:$0xff]  ;;  %v286_v61 = vld [vmem:[#allocation7 + $0xa8] sm:$0xff] }
  0x59   : > { %509 = vmatpush.msrb.mxu0 %v365_v15  ;;  %529 = vmatpush.msrb.mxu1 %v366_v16  ;;  %v287_v62 = vld [vmem:[#allocation7 + $0xb0] sm:$0xff]  ;;  %v288_v63 = vld [vmem:[#allocation7 + $0xb8] sm:$0xff]  ;;  %v277_v2 = vld [vmem:[#allocation7 + $0x60] sm:$0xff] }
  0x5a   : > { %549 = vmatpush.msrb.mxu2 %v367_v17  ;;  %569 = vmatpush.msrb.mxu3 %v368_v18  ;;  %v278_v3 = vld [vmem:[#allocation7 + $0x68] sm:$0xff]  ;;  %v279_v4 = vld [vmem:[#allocation7 + $0x70] sm:$0xff]  ;;  %v280_v5 = vld [vmem:[#allocation7 + $0x78] sm:$0xff] }
  0x5b   : > { %510 = vmatpush.msrb.mxu0 %v357_v19  ;;  %530 = vmatpush.msrb.mxu1 %v358_v20  ;;  %v269_v7 = vld [vmem:[#allocation7 + $0x20] sm:$0xff]  ;;  %v270_v8 = vld [vmem:[#allocation7 + $0x28] sm:$0xff]  ;;  %v271_v9 = vld [vmem:[#allocation7 + $0x30] sm:$0xff] }
  0x5c   : > { %550 = vmatpush.msrb.mxu2 %v359_v21  ;;  %570 = vmatpush.msrb.mxu3 %v360_v22  ;;  %v272_v10 = vld [vmem:[#allocation7 + $0x38] sm:$0xff] }
  0x5d   : > { %511 = vmatpush.msrb.mxu0 %v349_v23  ;;  %531 = vmatpush.msrb.mxu1 %v350_v24 }
  0x5e   : > { %551 = vmatpush.msrb.mxu2 %v351_v25  ;;  %571 = vmatpush.msrb.mxu3 %v352_v26 }
  0x5f   : > { %512 = vmatpush.msrb.mxu0 %v341_v27  ;;  %532 = vmatpush.msrb.mxu1 %v342_v28  ;;  %v1605_v27 = vld [vmem:[#allocation5 + $0x78] sm:$0xff]  ;;  %v1607_v28 = vld [vmem:[#allocation5 + $0x70] sm:$0xff] }
  0x60   : > { %552 = vmatpush.msrb.mxu2 %v343_v29  ;;  %572 = vmatpush.msrb.mxu3 %v344_v31  ;;  %v1611_v29 = vld [vmem:[#allocation5 + $0x68] sm:$0xff]  ;;  %v1629_v31 = vld [vmem:[#allocation5 + $0x50] sm:$0xff] }
  0x61   : > { %513 = vmatpush.msrb.mxu0 %v333_v32  ;;  %533 = vmatpush.msrb.mxu1 %v334_v33  ;;  %v1635_v32 = vld [vmem:[#allocation5 + $0x48] sm:$0xff]  ;;  %v1641_v33 = vld [vmem:[#allocation5 + $0x40] sm:$0xff] }
  0x62   : > { %553 = vmatpush.msrb.mxu2 %v335_v34  ;;  %573 = vmatpush.msrb.mxu3 %v336_v35  ;;  %v1647_v34 = vld [vmem:[#allocation5 + $0x38] sm:$0xff]  ;;  %v1653_v35 = vld [vmem:[#allocation5 + $0x30] sm:$0xff] }
  0x63   : > { %514 = vmatpush.msrb.mxu0 %v325_v36  ;;  %534 = vmatpush.msrb.mxu1 %v326_v37  ;;  %v1659_v36 = vld [vmem:[#allocation5 + $0x28] sm:$0xff]  ;;  %v1665_v37 = vld [vmem:[#allocation5 + $0x20] sm:$0xff] }
  0x64   : > { %554 = vmatpush.msrb.mxu2 %v327_v38  ;;  %574 = vmatpush.msrb.mxu3 %v328_v39  ;;  %v1671_v38 = vld [vmem:[#allocation5 + $0x18] sm:$0xff]  ;;  %v1677_v39 = vld [vmem:[#allocation5 + $0x10] sm:$0xff] }
  0x65   : > { %515 = vmatpush.msrb.mxu0 %v317_v40  ;;  %535 = vmatpush.msrb.mxu1 %v318_v41  ;;  %v1683_v40 = vld [vmem:[#allocation5 + $0x8] sm:$0xff]  ;;  %v1689_v41 = vld [vmem:[#allocation5] sm:$0xff] }
  0x66   : > { %555 = vmatpush.msrb.mxu2 %v319_v42  ;;  %575 = vmatpush.msrb.mxu3 %v320_v43 }
  0x67   : > { %516 = vmatpush.msrb.mxu0 %v309_v45  ;;  %536 = vmatpush.msrb.mxu1 %v310_v46 }
  0x68   : > { %556 = vmatpush.msrb.mxu2 %v311_v47  ;;  %576 = vmatpush.msrb.mxu3 %v312_v49 }
  0x69   : > { %517 = vmatpush.msrb.mxu0 %v301_v50  ;;  %537 = vmatpush.msrb.mxu1 %v302_v51  ;;  %v1247_v50 = vld [vmem:[%s2011_s3] ss:$0 sm:$0xff] }
  0x6a   : > { %557 = vmatpush.msrb.mxu2 %v303_v52  ;;  %577 = vmatpush.msrb.mxu3 %v304_v53 }
  0x6b   : > { %518 = vmatpush.msrb.mxu0 %v293_v55  ;;  %538 = vmatpush.msrb.mxu1 %v294_v56 }
  0x6c   : > { %558 = vmatpush.msrb.mxu2 %v295_v57  ;;  %578 = vmatpush.msrb.mxu3 %v296_v59 }
  0x6d   : > { %519 = vmatpush.msrb.mxu0 %v285_v60  ;;  %539 = vmatpush.msrb.mxu1 %v286_v61 }
  0x6e   : > { %559 = vmatpush.msrb.mxu2 %v287_v62  ;;  %579 = vmatpush.msrb.mxu3 %v288_v63 }
  0x6f   : > { %520 = vmatpush.msrb.mxu0 %v277_v2  ;;  %540 = vmatpush.msrb.mxu1 %v278_v3 }
  0x70   : > { %560 = vmatpush.msrb.mxu2 %v279_v4  ;;  %580 = vmatpush.msrb.mxu3 %v280_v5 }
  0x71   : > { %521 = vmatpush.msrb.mxu0 %v269_v7  ;;  %541 = vmatpush.msrb.mxu1 %v270_v8 }
  0x72   : > { %561 = vmatpush.msrb.mxu2 %v271_v9  ;;  %581 = vmatpush.msrb.mxu3 %v272_v10 }
  0xa7   : > { %v1595_v30 = vpop.xlane.xlu0 %394 }
  0xa8   : > { %1248 = vrsqrt.f32 %v1595_v30  ;;  %vm403_vm0 = vcmp.eq.f32.partialorder %v1595_v30, inf  ;;  %v406_v12 = vand.u32 2147483648, %v1595_v30  ;;  %vm405_vm1 = vcmp.eq.f32.partialorder %v1595_v30, 0.0 }
  0xae   : > { %v1249_v44 = vpop.eup %1248 }
  0xaf   : > { %v397_v48 = vmul.f32 %v1249_v44, %v1595_v30 }
  0xb1   : > { %v398_v54 = vmul.f32 %v1249_v44, %v397_v48 }
  0xb3   : > { %v399_v58 = vmul.f32 0.5, %v398_v54 }
  0xb5   : > { %v400_v1 = vsub.f32 1.5, %v399_v58 }
  0xb7   : > { %v401_v6 = vmul.f32 %v1249_v44, %v400_v1 }
  0xb9   : > { %v402_v11 = vmul.f32 %v401_v6, %v1595_v30 }
  0xbb   : > { %v404_v13 = vsel %vm403_vm0, %v1595_v30, %v402_v11  ;;  %v1625_v30 = vld [vmem:[#allocation5 + $0x58] sm:$0xff] }
  0xbc   : > { %v407_v14 = vsel %vm405_vm1, %v406_v12, %v404_v13 }
  0xbd   : > { %1250 = vrcp.f32 %v407_v14  ;;  %v420_v18 = vand.u32 2147483648, %v407_v14  ;;  %v418_v20 = vand.u32 2147483647, %v407_v14  ;;  %vm414_vm3 = vweird.f32 %v407_v14 }
  0xbe   : > { %vm408_vm6 = vcmp.gt.f32.partialorder %v407_v14, 0.0 }
  0xbf   : > { %v421_v22 = vor.u32 1.1754944e-38, %v420_v18  ;;  %vm419_vm5 = vcmp.eq.f32.partialorder %v418_v20, 8.507059e+37 }
  0xc3   : > { %v1251_v15 = vpop.eup %1250 }
  0xc4   : > { %v410_v16 = vmul.f32 %v1251_v15, %v407_v14  ;;  %vm415_vm2 = vweird.f32 %v1251_v15 }
  0xc5   : > { %vm416_vm4 = vmor %vm414_vm3, %vm415_vm2 }
  0xc6   : > { %v411_v17 = vsub.f32 1.0, %v410_v16 }
  0xc8   : > { %v412_v19 = vmul.f32 %v1251_v15, %v411_v17 }
  0xca   : > { %v413_v21 = vadd.f32 %v1251_v15, %v412_v19 }
  0xcc   : > { %v417_v23 = vsel %vm416_vm4, %v1251_v15, %v413_v21 }
  0xcd   : > { %v422_v24 = vsel %vm419_vm5, %v421_v22, %v417_v23 }
  0xce   : > { %v424_v25 = vsel %vm408_vm6, %v422_v24, 0.0 }
  0xcf   : > { %v425_v26 = vmul.f32 %v424_v25, %v1591_v0  ;;  %v1621_v0 = vld [vmem:[#allocation5 + $0x60] sm:$0xff] }
  0xd1   : > { %442 = vmatmul.f32.vlgmr.msra.gmra.mxu0 %v425_v26  ;;  %462 = vmatmul.f32.vlgmr.msra.gmra.mxu1 %v425_v26 }
  0xd2   : > { %482 = vmatmul.f32.vlgmr.msra.gmra.mxu2 %v425_v26  ;;  %502 = vmatmul.f32.vlgmr.msra.gmra.mxu3 %v425_v26 }
  0xd3   : > { %590 = vmatpush.msra.mxu0 %v1605_v27  ;;  %648 = vmatpush.msra.mxu1 %v1605_v27 }
  0xd4   : > { %706 = vmatpush.msra.mxu2 %v1605_v27  ;;  %764 = vmatpush.msra.mxu3 %v1605_v27 }
  0xd5   : > { %591 = vmatpush.msra.mxu0 %v1607_v28  ;;  %649 = vmatpush.msra.mxu1 %v1607_v28 }
  0xd6   : > { %707 = vmatpush.msra.mxu2 %v1607_v28  ;;  %765 = vmatpush.msra.mxu3 %v1607_v28 }
  0xd7   : > { %592 = vmatpush.msra.mxu0 %v1611_v29  ;;  %650 = vmatpush.msra.mxu1 %v1611_v29 }
  0xd8   : > { %708 = vmatpush.msra.mxu2 %v1611_v29  ;;  %766 = vmatpush.msra.mxu3 %v1611_v29 }
  0xd9   : > { %522 = vmatmul.f32.vlgmr.msrb.gmra.mxu0 %v425_v26  ;;  %542 = vmatmul.f32.vlgmr.msrb.gmra.mxu1 %v425_v26 }
  0xda   : > { %562 = vmatmul.f32.vlgmr.msrb.gmra.mxu2 %v425_v26  ;;  %582 = vmatmul.f32.vlgmr.msrb.gmra.mxu3 %v425_v26 }
  0xdb   : > { %593 = vmatpush.msra.mxu0 %v1621_v0  ;;  %651 = vmatpush.msra.mxu1 %v1621_v0 }
  0xdc   : > { %709 = vmatpush.msra.mxu2 %v1621_v0  ;;  %767 = vmatpush.msra.mxu3 %v1621_v0 }
  0xdd   : > { %594 = vmatpush.msra.mxu0 %v1625_v30  ;;  %652 = vmatpush.msra.mxu1 %v1625_v30 }
  0xde   : > { %710 = vmatpush.msra.mxu2 %v1625_v30  ;;  %768 = vmatpush.msra.mxu3 %v1625_v30 }
  0xdf   : > { %595 = vmatpush.msra.mxu0 %v1629_v31  ;;  %653 = vmatpush.msra.mxu1 %v1629_v31 }
  0xe0   : > { %711 = vmatpush.msra.mxu2 %v1629_v31  ;;  %769 = vmatpush.msra.mxu3 %v1629_v31 }
  0xe1   : > { %596 = vmatpush.msra.mxu0 %v1635_v32  ;;  %654 = vmatpush.msra.mxu1 %v1635_v32 }
  0xe2   : > { %712 = vmatpush.msra.mxu2 %v1635_v32  ;;  %770 = vmatpush.msra.mxu3 %v1635_v32 }
  0xe3   : > { %597 = vmatpush.msra.mxu0 %v1641_v33  ;;  %655 = vmatpush.msra.mxu1 %v1641_v33 }
  0xe4   : > { %713 = vmatpush.msra.mxu2 %v1641_v33  ;;  %771 = vmatpush.msra.mxu3 %v1641_v33 }
  0xe5   : > { %598 = vmatpush.msra.mxu0 %v1647_v34  ;;  %656 = vmatpush.msra.mxu1 %v1647_v34 }
  0xe6   : > { %714 = vmatpush.msra.mxu2 %v1647_v34  ;;  %772 = vmatpush.msra.mxu3 %v1647_v34 }
  0xe7   : > { %599 = vmatpush.msra.mxu0 %v1653_v35  ;;  %657 = vmatpush.msra.mxu1 %v1653_v35 }
  0xe8   : > { %715 = vmatpush.msra.mxu2 %v1653_v35  ;;  %773 = vmatpush.msra.mxu3 %v1653_v35 }
  0xe9   : > { %600 = vmatpush.msra.mxu0 %v1659_v36  ;;  %658 = vmatpush.msra.mxu1 %v1659_v36 }
  0xea   : > { %716 = vmatpush.msra.mxu2 %v1659_v36  ;;  %774 = vmatpush.msra.mxu3 %v1659_v36 }
  0xeb   : > { %601 = vmatpush.msra.mxu0 %v1665_v37  ;;  %659 = vmatpush.msra.mxu1 %v1665_v37 }
  0xec   : > { %717 = vmatpush.msra.mxu2 %v1665_v37  ;;  %775 = vmatpush.msra.mxu3 %v1665_v37 }
  0xed   : > { %602 = vmatpush.msra.mxu0 %v1671_v38  ;;  %660 = vmatpush.msra.mxu1 %v1671_v38 }
  0xee   : > { %718 = vmatpush.msra.mxu2 %v1671_v38  ;;  %776 = vmatpush.msra.mxu3 %v1671_v38 }
  0xef   : > { %603 = vmatpush.msra.mxu0 %v1677_v39  ;;  %661 = vmatpush.msra.mxu1 %v1677_v39 }
  0xf0   : > { %719 = vmatpush.msra.mxu2 %v1677_v39  ;;  %777 = vmatpush.msra.mxu3 %v1677_v39 }
  0xf1   : > { %604 = vmatpush.msra.mxu0 %v1683_v40  ;;  %662 = vmatpush.msra.mxu1 %v1683_v40 }
  0xf2   : > { %720 = vmatpush.msra.mxu2 %v1683_v40  ;;  %778 = vmatpush.msra.mxu3 %v1683_v40 }
  0xf3   : > { %605 = vmatpush.msra.mxu0 %v1689_v41  ;;  %663 = vmatpush.msra.mxu1 %v1689_v41 }
  0xf4   : > { %721 = vmatpush.msra.mxu2 %v1689_v41  ;;  %779 = vmatpush.msra.mxu3 %v1689_v41 }
  0xf5   : > { %822 = vmatpush.msrb.mxu0 %v1605_v27  ;;  %880 = vmatpush.msrb.mxu1 %v1605_v27 }
  0xf6   : > { %938 = vmatpush.msrb.mxu2 %v1605_v27  ;;  %996 = vmatpush.msrb.mxu3 %v1605_v27 }
  0xf7   : > { %823 = vmatpush.msrb.mxu0 %v1607_v28  ;;  %881 = vmatpush.msrb.mxu1 %v1607_v28 }
  0xf8   : > { %939 = vmatpush.msrb.mxu2 %v1607_v28  ;;  %997 = vmatpush.msrb.mxu3 %v1607_v28 }
  0xf9   : > { %824 = vmatpush.msrb.mxu0 %v1611_v29  ;;  %882 = vmatpush.msrb.mxu1 %v1611_v29 }
  0xfa   : > { %940 = vmatpush.msrb.mxu2 %v1611_v29  ;;  %998 = vmatpush.msrb.mxu3 %v1611_v29 }
  0xfb   : > { %825 = vmatpush.msrb.mxu0 %v1621_v0  ;;  %883 = vmatpush.msrb.mxu1 %v1621_v0 }
  0xfc   : > { %941 = vmatpush.msrb.mxu2 %v1621_v0  ;;  %999 = vmatpush.msrb.mxu3 %v1621_v0 }
  0xfd   : > { %826 = vmatpush.msrb.mxu0 %v1625_v30  ;;  %884 = vmatpush.msrb.mxu1 %v1625_v30 }
  0xfe   : > { %942 = vmatpush.msrb.mxu2 %v1625_v30  ;;  %1000 = vmatpush.msrb.mxu3 %v1625_v30 }
  0xff   : > { %827 = vmatpush.msrb.mxu0 %v1629_v31  ;;  %885 = vmatpush.msrb.mxu1 %v1629_v31 }
 0x100   : > { %943 = vmatpush.msrb.mxu2 %v1629_v31  ;;  %1001 = vmatpush.msrb.mxu3 %v1629_v31 }
 0x101   : > { %828 = vmatpush.msrb.mxu0 %v1635_v32  ;;  %886 = vmatpush.msrb.mxu1 %v1635_v32 }
 0x102   : > { %944 = vmatpush.msrb.mxu2 %v1635_v32  ;;  %1002 = vmatpush.msrb.mxu3 %v1635_v32 }
 0x103   : > { %829 = vmatpush.msrb.mxu0 %v1641_v33  ;;  %887 = vmatpush.msrb.mxu1 %v1641_v33 }
 0x104   : > { %945 = vmatpush.msrb.mxu2 %v1641_v33  ;;  %1003 = vmatpush.msrb.mxu3 %v1641_v33 }
 0x105   : > { %830 = vmatpush.msrb.mxu0 %v1647_v34  ;;  %888 = vmatpush.msrb.mxu1 %v1647_v34 }
 0x106   : > { %946 = vmatpush.msrb.mxu2 %v1647_v34  ;;  %1004 = vmatpush.msrb.mxu3 %v1647_v34 }
 0x107   : > { %831 = vmatpush.msrb.mxu0 %v1653_v35  ;;  %889 = vmatpush.msrb.mxu1 %v1653_v35 }
 0x108   : > { %947 = vmatpush.msrb.mxu2 %v1653_v35  ;;  %1005 = vmatpush.msrb.mxu3 %v1653_v35 }
 0x109   : > { %832 = vmatpush.msrb.mxu0 %v1659_v36  ;;  %890 = vmatpush.msrb.mxu1 %v1659_v36 }
 0x10a   : > { %948 = vmatpush.msrb.mxu2 %v1659_v36  ;;  %1006 = vmatpush.msrb.mxu3 %v1659_v36 }
 0x10b   : > { %833 = vmatpush.msrb.mxu0 %v1665_v37  ;;  %891 = vmatpush.msrb.mxu1 %v1665_v37 }
 0x10c   : > { %949 = vmatpush.msrb.mxu2 %v1665_v37  ;;  %1007 = vmatpush.msrb.mxu3 %v1665_v37 }
 0x10d   : > { %834 = vmatpush.msrb.mxu0 %v1671_v38  ;;  %892 = vmatpush.msrb.mxu1 %v1671_v38 }
 0x10e   : > { %950 = vmatpush.msrb.mxu2 %v1671_v38  ;;  %1008 = vmatpush.msrb.mxu3 %v1671_v38 }
 0x10f   : > { %835 = vmatpush.msrb.mxu0 %v1677_v39  ;;  %893 = vmatpush.msrb.mxu1 %v1677_v39 }
 0x110   : > { %951 = vmatpush.msrb.mxu2 %v1677_v39  ;;  %1009 = vmatpush.msrb.mxu3 %v1677_v39 }
 0x111   : > { %836 = vmatpush.msrb.mxu0 %v1683_v40  ;;  %894 = vmatpush.msrb.mxu1 %v1683_v40 }
 0x112   : > { %952 = vmatpush.msrb.mxu2 %v1683_v40  ;;  %1010 = vmatpush.msrb.mxu3 %v1683_v40 }
 0x113   : > { %837 = vmatpush.msrb.mxu0 %v1689_v41  ;;  %895 = vmatpush.msrb.mxu1 %v1689_v41 }
 0x114   : > { %953 = vmatpush.msrb.mxu2 %v1689_v41  ;;  %1011 = vmatpush.msrb.mxu3 %v1689_v41 }
 0x14e   : > { %v443_v42 = vpop.f32.mrf.mxu0  ;;  %v463_v43 = vpop.f32.mrf.mxu1 }
 0x14f   : > { %606 = vmatmul.f32.vlgmr.msra.gmra.mxu0 %v443_v42  ;;  %664 = vmatmul.f32.vlgmr.msra.gmra.mxu1 %v463_v43 }
 0x155   : > { %v483_v44 = vpop.f32.mrf.mxu2  ;;  %v503_v45 = vpop.f32.mrf.mxu3 }
 0x156   : > { %722 = vmatmul.f32.vlgmr.msra.gmra.mxu2 %v483_v44  ;;  %780 = vmatmul.f32.vlgmr.msra.gmra.mxu3 %v503_v45  ;;  %v523_v46 = vpop.f32.mrf.mxu0  ;;  %v543_v47 = vpop.f32.mrf.mxu1 }
 0x157   : > { %838 = vmatmul.f32.vlgmr.msrb.gmra.mxu0 %v523_v46  ;;  %896 = vmatmul.f32.vlgmr.msrb.gmra.mxu1 %v543_v47 }
 0x15d   : > { %v563_v48 = vpop.f32.mrf.mxu2  ;;  %v583_v49 = vpop.f32.mrf.mxu3 }
 0x15e   : > { %954 = vmatmul.f32.vlgmr.msrb.gmra.mxu2 %v563_v48  ;;  %1012 = vmatmul.f32.vlgmr.msrb.gmra.mxu3 %v583_v49 }
 0x1cc   : > { %v607_v51 = vpop.f32.mrf.mxu0  ;;  %v665_v52 = vpop.f32.mrf.mxu1 }
 0x1cd   : > { %v1768_v53 = vadd.f32 %v1247_v50, %v607_v51  ;;  %v1770_v54 = vadd.f32 %v1247_v50, %v665_v52 }
 0x1cf   : > { %668 = vmax.xlane.f32.xlu1 %v1770_v54  ;;  %610 = vmax.xlane.f32.xlu0 %v1768_v53 }
 0x1d4   : > { %v839_v55 = vpop.f32.mrf.mxu0  ;;  %v897_v56 = vpop.f32.mrf.mxu1 }
 0x1d5   : > { %v1774_v57 = vadd.f32 %v1247_v50, %v839_v55  ;;  %v1776_v58 = vadd.f32 %v1247_v50, %v897_v56 }
 0x1d7   : > { %842 = vmax.xlane.f32.xlu2 %v1774_v57  ;;  %900 = vmax.xlane.f32.xlu0 %v1776_v58 }
 0x1d9   : > { %v723_v59 = vpop.f32.mrf.mxu2  ;;  %v781_v60 = vpop.f32.mrf.mxu3 }
 0x1da   : > { %v1780_v61 = vadd.f32 %v1247_v50, %v723_v59  ;;  %v1783_v62 = vadd.f32 %v1247_v50, %v781_v60 }
 0x1dc   : > { %726 = vmax.xlane.f32.xlu1 %v1780_v61 }
 0x1df   : > { %784 = vmax.xlane.f32.xlu2 %v1783_v62 }
 0x1e1   : > { %v955_v63 = vpop.f32.mrf.mxu2  ;;  %v1013_v2 = vpop.f32.mrf.mxu3 }
 0x1e2   : > { %v1786_v1 = vadd.f32 %v1247_v50, %v955_v63  ;;  %v1789_v3 = vadd.f32 %v1247_v50, %v1013_v2 }
 0x1e4   : > { %958 = vmax.xlane.f32.xlu1 %v1786_v1 }
 0x1e7   : > { %1016 = vmax.xlane.f32.xlu2 %v1789_v3 }
 0x242   : > { %v1792_v4 = vpop.xlane.xlu1 %668  ;;  %v1794_v5 = vpop.xlane.xlu0 %610 }
 0x243   : > { %vm670_vm7 = vcmp.ge.f32.partialorder %v1770_v54, %v1792_v4  ;;  %vm612_vm8 = vcmp.ge.f32.partialorder %v1768_v53, %v1794_v5  ;;  %v683_v51 = vsub.f32 %v1770_v54, %v1792_v4  ;;  %v625_v52 = vsub.f32 %v1768_v53, %v1794_v5 }
 0x244   : > { %v671_v6 = vsel %vm670_vm7, -inf, %v1770_v54  ;;  %v613_v7 = vsel %vm612_vm8, -inf, %v1768_v53 }
 0x245   : > { %672 = vmax.xlane.f32.xlu1 %v671_v6  ;;  %614 = vmax.xlane.f32.xlu0 %v613_v7  ;;  %v684_v55 = vmul.f32 1.442695, %v683_v51  ;;  %v626_v56 = vmul.f32 1.442695, %v625_v52 }
 0x247   : > { %1252 = vpow2.f32 %v684_v55 }
 0x248   : > { %1254 = vpow2.f32 %v626_v56 }
 0x24a   : > { %v1802_v8 = vpop.xlane.xlu2 %842  ;;  %v1814_v13 = vpop.xlane.xlu0 %900 }
 0x24b   : > { %vm844_vm9 = vcmp.ge.f32.partialorder %v1774_v57, %v1802_v8  ;;  %vm902_vm12 = vcmp.ge.f32.partialorder %v1776_v58, %v1814_v13  ;;  %v857_v59 = vsub.f32 %v1774_v57, %v1802_v8 }
 0x24c   : > { %v845_v9 = vsel %vm844_vm9, -inf, %v1774_v57  ;;  %v903_v16 = vsel %vm902_vm12, -inf, %v1776_v58 }
 0x24d   : > { %846 = vmax.xlane.f32.xlu1 %v845_v9  ;;  %v858_v60 = vmul.f32 1.442695, %v857_v59  ;;  %v1253_v63 = vpop.eup %1252 }
 0x24f   : > { %v1807_v10 = vpop.xlane.xlu1 %726  ;;  %1256 = vpow2.f32 %v858_v60 }
 0x250   : > { %vm728_vm10 = vcmp.ge.f32.partialorder %v1780_v61, %v1807_v10  ;;  %v741_v2 = vsub.f32 %v1780_v61, %v1807_v10 }
 0x251   : > { %v729_v11 = vsel %vm728_vm10, -inf, %v1780_v61 }
 0x252   : > { %730 = vmax.xlane.f32.xlu2 %v729_v11  ;;  %v1812_v12 = vpop.xlane.xlu2 %784  ;;  %v742_v10 = vmul.f32 1.442695, %v741_v2 }
 0x253   : > { %vm786_vm11 = vcmp.ge.f32.partialorder %v1783_v62, %v1812_v12  ;;  %v799_v8 = vsub.f32 %v1783_v62, %v1812_v12 }
 0x254   : > { %v787_v14 = vsel %vm786_vm11, -inf, %v1783_v62  ;;  %1258 = vpow2.f32 %v742_v10 }
 0x255   : > { %788 = vmax.xlane.f32.xlu0 %v787_v14 }
 0x257   : > { %v1821_v15 = vpop.xlane.xlu1 %958 }
 0x258   : > { %vm960_vm13 = vcmp.ge.f32.partialorder %v1786_v1, %v1821_v15 }
 0x259   : > { %v961_v19 = vsel %vm960_vm13, -inf, %v1786_v1 }
 0x25a   : > { %904 = vmax.xlane.f32.xlu2 %v903_v16  ;;  %v1826_v17 = vpop.xlane.xlu2 %1016 }
 0x25b   : > { %vm1018_vm14 = vcmp.ge.f32.partialorder %v1789_v3, %v1826_v17  ;;  %v1031_v12 = vsub.f32 %v1789_v3, %v1826_v17 }
 0x25c   : > { %v1019_v18 = vsel %vm1018_vm14, -inf, %v1789_v3 }
 0x25d   : > { %1020 = vmax.xlane.f32.xlu1 %v1019_v18  ;;  %962 = vmax.xlane.f32.xlu0 %v961_v19 }
 0x2b8   : > { %v673_v20 = vpop.xlane.xlu1 %672  ;;  %v615_v21 = vpop.xlane.xlu0 %614 }
 0x2b9   : > { %vm674_vm15 = vcmp.ge.f32.partialorder %v671_v6, %v673_v20  ;;  %vm616_vm0 = vcmp.ge.f32.partialorder %v613_v7, %v615_v21 }
 0x2ba   : > { %v675_v22 = vsel %vm674_vm15, -inf, %v671_v6  ;;  %v617_v23 = vsel %vm616_vm0, -inf, %v613_v7 }
 0x2bb   : > { %676 = vmax.xlane.f32.xlu0 %v675_v22  ;;  %618 = vmax.xlane.f32.xlu2 %v617_v23 }
 0x2c0   : > { %v847_v24 = vpop.xlane.xlu1 %846 }
 0x2c1   : > { %vm848_vm1 = vcmp.ge.f32.partialorder %v845_v9, %v847_v24 }
 0x2c2   : > { %v849_v25 = vsel %vm848_vm1, -inf, %v845_v9  ;;  %v1255_v9 = vpop.eup %1254 }
 0x2c3   : > { %850 = vmax.xlane.f32.xlu0 %v849_v25 }
 0x2c5   : > { %v731_v26 = vpop.xlane.xlu2 %730 }
 0x2c6   : > { %vm732_vm2 = vcmp.ge.f32.partialorder %v729_v11, %v731_v26 }
 0x2c7   : > { %v733_v27 = vsel %vm732_vm2, -inf, %v729_v11  ;;  %v800_v11 = vmul.f32 1.442695, %v799_v8 }
 0x2c8   : > { %734 = vmax.xlane.f32.xlu1 %v733_v27  ;;  %v789_v28 = vpop.xlane.xlu0 %788 }
 0x2c9   : > { %vm790_vm3 = vcmp.ge.f32.partialorder %v787_v14, %v789_v28  ;;  %1260 = vpow2.f32 %v800_v11 }
 0x2ca   : > { %v791_v29 = vsel %vm790_vm3, -inf, %v787_v14  ;;  %v915_v14 = vsub.f32 %v1776_v58, %v1814_v13 }
 0x2cb   : > { %792 = vmax.xlane.f32.xlu2 %v791_v29 }
 0x2cd   : > { %v905_v0 = vpop.xlane.xlu2 %904 }
 0x2ce   : > { %vm906_vm4 = vcmp.ge.f32.partialorder %v903_v16, %v905_v0 }
 0x2cf   : > { %v907_v30 = vsel %vm906_vm4, -inf, %v903_v16  ;;  %v973_v16 = vsub.f32 %v1786_v1, %v1821_v15 }
 0x2d0   : > { %908 = vmax.xlane.f32.xlu1 %v907_v30  ;;  %v1021_v31 = vpop.xlane.xlu1 %1020  ;;  %v963_v32 = vpop.xlane.xlu0 %962 }
 0x2d1   : > { %vm1022_vm5 = vcmp.ge.f32.partialorder %v1019_v18, %v1021_v31  ;;  %vm964_vm6 = vcmp.ge.f32.partialorder %v961_v19, %v963_v32  ;;  %v974_v13 = vmul.f32 1.442695, %v973_v16 }
 0x2d2   : > { %v1023_v33 = vsel %vm1022_vm5, -inf, %v1019_v18  ;;  %v965_v34 = vsel %vm964_vm6, -inf, %v961_v19  ;;  %v916_v19 = vmul.f32 1.442695, %v915_v14 }
 0x2d3   : > { %1024 = vmax.xlane.f32.xlu0 %v1023_v33  ;;  %966 = vmax.xlane.f32.xlu2 %v965_v34 }
 0x2d4   : > { %1262 = vpow2.f32 %v916_v19 }
 0x2d5   : > { %1264 = vpow2.f32 %v974_v13 }
 0x32e   : > { %v619_v35 = vpop.xlane.xlu2 %618  ;;  %v677_v36 = vpop.xlane.xlu0 %676 }
 0x32f   : > { %vm620_vm7 = vcmp.ge.f32.partialorder %v617_v23, %v619_v35  ;;  %vm678_vm8 = vcmp.ge.f32.partialorder %v675_v22, %v677_v36 }
 0x330   : > { %v621_v37 = vsel %vm620_vm7, -inf, %v617_v23  ;;  %v679_v38 = vsel %vm678_vm8, -inf, %v675_v22  ;;  %v1032_v22 = vmul.f32 1.442695, %v1031_v12 }
 0x331   : > { %622 = vmax.xlane.f32.xlu1 %v621_v37  ;;  %680 = vmax.xlane.f32.xlu2 %v679_v38 }
 0x332   : > { %1266 = vpow2.f32 %v1032_v22 }
 0x336   : > { %v851_v39 = vpop.xlane.xlu0 %850 }
 0x337   : > { %vm852_vm9 = vcmp.ge.f32.partialorder %v849_v25, %v851_v39 }
 0x338   : > { %v853_v40 = vsel %vm852_vm9, -inf, %v849_v25 }
 0x339   : > { %854 = vmax.xlane.f32.xlu2 %v853_v40 }
 0x33b   : > { %v735_v41 = vpop.xlane.xlu1 %734 }
 0x33c   : > { %vm736_vm10 = vcmp.ge.f32.partialorder %v733_v27, %v735_v41 }
 0x33d   : > { %v737_v42 = vsel %vm736_vm10, -inf, %v733_v27 }
 0x33e   : > { %738 = vmax.xlane.f32.xlu0 %v737_v42  ;;  %v793_v43 = vpop.xlane.xlu2 %792 }
 0x33f   : > { %vm794_vm11 = vcmp.ge.f32.partialorder %v791_v29, %v793_v43 }
 0x340   : > { %v795_v44 = vsel %vm794_vm11, -inf, %v791_v29 }
 0x341   : > { %796 = vmax.xlane.f32.xlu1 %v795_v44 }
 0x343   : > { %v909_v45 = vpop.xlane.xlu1 %908 }
 0x344   : > { %vm910_vm12 = vcmp.ge.f32.partialorder %v907_v30, %v909_v45 }
 0x345   : > { %v911_v46 = vsel %vm910_vm12, -inf, %v907_v30 }
 0x346   : > { %912 = vmax.xlane.f32.xlu0 %v911_v46  ;;  %v967_v47 = vpop.xlane.xlu2 %966  ;;  %v1025_v48 = vpop.xlane.xlu0 %1024 }
 0x347   : > { %vm968_vm13 = vcmp.ge.f32.partialorder %v965_v34, %v967_v47  ;;  %vm1026_vm14 = vcmp.ge.f32.partialorder %v1023_v33, %v1025_v48 }
 0x348   : > { %v969_v49 = vsel %vm968_vm13, -inf, %v965_v34  ;;  %v1027_v50 = vsel %vm1026_vm14, -inf, %v1023_v33 }
 0x349   : > { %970 = vmax.xlane.f32.xlu1 %v969_v49  ;;  %1028 = vmax.xlane.f32.xlu2 %v1027_v50 }
 0x3a4   : > { %v623_v6 = vpop.xlane.xlu1 %622  ;;  %v681_v7 = vpop.xlane.xlu2 %680 }
 0x3a5   : > { %vm624_vm15 = vcmp.ge.f32.partialorder %v1768_v53, %v623_v6  ;;  %vm682_vm0 = vcmp.ge.f32.partialorder %v1770_v54, %v681_v7  ;;  %v1257_v54 = vpop.eup %1256 }
 0x3a6   : > { %v1842_v4 = vsel %vm624_vm15, %v1255_v9, 0.0  ;;  %v1844_v5 = vsel %vm682_vm0, %v1253_v63, 0.0  ;;  %v1259_v21 = vpop.eup %1258 }
 0x3a7   : > { %629 = vadd.xlane.f32.xlu0 %v1842_v4  ;;  %687 = vadd.xlane.f32.xlu1 %v1844_v5  ;;  %v1261_v15 = vpop.eup %1260 }
 0x3a8   : > { %v1263_v25 = vpop.eup %1262 }
 0x3a9   : > { %v1265_v26 = vpop.eup %1264 }
 0x3aa   : > { %v1267_v29 = vpop.eup %1266 }
 0x3ac   : > { %v855_v53 = vpop.xlane.xlu2 %854 }
 0x3ad   : > { %vm856_vm1 = vcmp.ge.f32.partialorder %v1774_v57, %v855_v53 }
 0x3ae   : > { %v1855_v18 = vsel %vm856_vm1, %v1257_v54, 0.0 }
 0x3af   : > { %861 = vadd.xlane.f32.xlu1 %v1855_v18 }
 0x3b1   : > { %v739_v20 = vpop.xlane.xlu0 %738 }
 0x3b2   : > { %vm740_vm2 = vcmp.ge.f32.partialorder %v1780_v61, %v739_v20 }
 0x3b3   : > { %v1861_v23 = vsel %vm740_vm2, %v1259_v21, 0.0 }
 0x3b4   : > { %745 = vadd.xlane.f32.xlu2 %v1861_v23  ;;  %v797_v57 = vpop.xlane.xlu1 %796 }
 0x3b5   : > { %vm798_vm3 = vcmp.ge.f32.partialorder %v1783_v62, %v797_v57 }
 0x3b6   : > { %v1865_v17 = vsel %vm798_vm3, %v1261_v15, 0.0 }
 0x3b7   : > { %803 = vadd.xlane.f32.xlu0 %v1865_v17 }
 0x3b9   : > { %v913_v24 = vpop.xlane.xlu0 %912 }
 0x3ba   : > { %vm914_vm4 = vcmp.ge.f32.partialorder %v1776_v58, %v913_v24 }
 0x3bb   : > { %v1869_v61 = vsel %vm914_vm4, %v1263_v25, 0.0 }
 0x3bc   : > { %919 = vadd.xlane.f32.xlu2 %v1869_v61  ;;  %v971_v27 = vpop.xlane.xlu1 %970  ;;  %v1029_v28 = vpop.xlane.xlu2 %1028 }
 0x3bd   : > { %vm972_vm5 = vcmp.ge.f32.partialorder %v1786_v1, %v971_v27  ;;  %vm1030_vm6 = vcmp.ge.f32.partialorder %v1789_v3, %v1029_v28 }
 0x3be   : > { %v1874_v62 = vsel %vm972_vm5, %v1265_v26, 0.0  ;;  %v1876_v0 = vsel %vm1030_vm6, %v1267_v29, 0.0 }
 0x3bf   : > { %977 = vadd.xlane.f32.xlu0 %v1874_v62  ;;  %1035 = vadd.xlane.f32.xlu1 %v1876_v0 }
 0x41a   : > { %v688_v58 = vpop.xlane.xlu1 %687  ;;  %v630_v30 = vpop.xlane.xlu0 %629 }
 0x41b   : > { %1268 = vrcp.f32 %v688_v58  ;;  %vm694_vm8 = vweird.f32 %v688_v58  ;;  %v700_v40 = vand.u32 2147483648, %v688_v58  ;;  %v642_v41 = vand.u32 2147483648, %v630_v30 }
 0x41c   : > { %1270 = vrcp.f32 %v630_v30  ;;  %v698_v44 = vand.u32 2147483647, %v688_v58  ;;  %vm636_vm11 = vweird.f32 %v630_v30  ;;  %v640_v46 = vand.u32 2147483647, %v630_v30 }
 0x41d   : > { %v701_v52 = vor.u32 1.1754944e-38, %v700_v40  ;;  %v643_v55 = vor.u32 1.1754944e-38, %v642_v41 }
 0x41e   : > { %vm699_vm13 = vcmp.eq.f32.partialorder %v698_v44, 8.507059e+37  ;;  %vm641_vm14 = vcmp.eq.f32.partialorder %v640_v46, 8.507059e+37 }
 0x421   : > { %v1269_v31 = vpop.eup %1268 }
 0x422   : > { %v1271_v32 = vpop.eup %1270  ;;  %v690_v33 = vmul.f32 %v1269_v31, %v688_v58  ;;  %v1880_v34 = vpop.xlane.xlu1 %861  ;;  %vm695_vm7 = vweird.f32 %v1269_v31 }
 0x423   : > { %v632_v1 = vmul.f32 %v1271_v32, %v630_v30  ;;  %1272 = vrcp.f32 %v1880_v34  ;;  %vm637_vm9 = vweird.f32 %v1271_v32  ;;  %vm1885_vm10 = vmor %vm694_vm8, %vm695_vm7  ;;  %v872_v59 = vand.u32 2147483647, %v1880_v34 }
 0x424   : > { %v691_v3 = vsub.f32 1.0, %v690_v33  ;;  %vm1889_vm12 = vmor %vm636_vm11, %vm637_vm9  ;;  %v874_v60 = vand.u32 2147483648, %v1880_v34  ;;  %vm868_vm15 = vweird.f32 %v1880_v34 }
 0x425   : > { %v633_v35 = vsub.f32 1.0, %v632_v1  ;;  %vm1905_vm0 = vcmp.eq.f32.partialorder %v872_v59, 8.507059e+37 }
 0x426   : > { %v692_v36 = vmul.f32 %v1269_v31, %v691_v3  ;;  %v875_v12 = vor.u32 1.1754944e-38, %v874_v60 }
 0x427   : > { %v634_v37 = vmul.f32 %v1271_v32, %v633_v35  ;;  %v746_v38 = vpop.xlane.xlu2 %745 }
 0x428   : > { %v693_v39 = vadd.f32 %v1269_v31, %v692_v36  ;;  %1274 = vrcp.f32 %v746_v38  ;;  %v756_v8 = vand.u32 2147483647, %v746_v38  ;;  %v758_v14 = vand.u32 2147483648, %v746_v38 }
 0x429   : > { %v1883_v42 = vpop.eup %1272  ;;  %v635_v45 = vadd.f32 %v1271_v32, %v634_v37  ;;  %vm752_vm2 = vweird.f32 %v746_v38 }
 0x42a   : > { %v864_v48 = vmul.f32 %v1883_v42, %v1880_v34  ;;  %v804_v49 = vpop.xlane.xlu0 %803  ;;  %v697_v50 = vsel %vm1885_vm10, %v1269_v31, %v693_v39  ;;  %vm869_vm1 = vweird.f32 %v1883_v42  ;;  %vm1916_vm4 = vcmp.eq.f32.partialorder %v756_v8, 8.507059e+37 }
 0x42b   : > { %v639_v51 = vsel %vm1889_vm12, %v1271_v32, %v635_v45  ;;  %1276 = vrcp.f32 %v804_v49  ;;  %v702_v2 = vsel %vm699_vm13, %v701_v52, %v697_v50  ;;  %v814_v24 = vand.u32 2147483647, %v804_v49  ;;  %vm1927_vm5 = vmor %vm868_vm15, %vm869_vm1 }
 0x42c   : > { %v865_v56 = vsub.f32 1.0, %v864_v48  ;;  %v644_v6 = vsel %vm641_vm14, %v643_v55, %v639_v51  ;;  %v703_v54 = vmul.f32 0.125, %v702_v2  ;;  %v759_v25 = vor.u32 1.1754944e-38, %v758_v14 }
 0x42d   : > { %v645_v16 = vmul.f32 0.125, %v644_v6  ;;  %v816_v27 = vand.u32 2147483648, %v804_v49  ;;  %vm810_vm8 = vweird.f32 %v804_v49  ;;  %vm1937_vm9 = vcmp.eq.f32.partialorder %v814_v24, 8.507059e+37 }
 0x42e   : > { %v1275_v63 = vpop.eup %1274  ;;  %v866_v7 = vmul.f32 %v1883_v42, %v865_v56  ;;  %v704_v28 = vmul.f32 %v703_v54, %v1844_v5 }
 0x42f   : > { %v748_v9 = vmul.f32 %v1275_v63, %v746_v38  ;;  %v1902_v10 = vpop.xlane.xlu2 %919  ;;  %vm753_vm3 = vweird.f32 %v1275_v63  ;;  %v646_v29 = vmul.f32 %v645_v16, %v1842_v4  ;;  %v817_v36 = vor.u32 1.1754944e-38, %v816_v27 }
 0x430   : > { %1278 = vrcp.f32 %v1902_v10  ;;  %v867_v20 = vadd.f32 %v1883_v42, %v866_v7  ;;  %vm754_vm6 = vmor %vm752_vm2, %vm753_vm3  ;;  %v930_v4 = vand.u32 2147483647, %v1902_v10  ;;  %v932_v37 = vand.u32 2147483648, %v1902_v10 }
 0x431   : > { %v1277_v53 = vpop.eup %1276  ;;  %v749_v19 = vsub.f32 1.0, %v748_v9  ;;  %vm926_vm11 = vweird.f32 %v1902_v10 }
 0x432   : > { %v806_v21 = vmul.f32 %v1277_v53, %v804_v49  ;;  %v1912_v13 = vpop.xlane.xlu1 %1035  ;;  %v1914_v22 = vpop.xlane.xlu0 %977  ;;  %v871_v32 = vsel %vm1927_vm5, %v1883_v42, %v867_v20  ;;  %vm811_vm7 = vweird.f32 %v1277_v53  ;;  %v705_v42 = vadd.f32 %v704_v28, %v646_v29 }
 0x433   : > { %v750_v57 = vmul.f32 %v1275_v63, %v749_v19  ;;  %1280 = vrcp.f32 %v1912_v13  ;;  %v876_v38 = vsel %vm1905_vm0, %v875_v12, %v871_v32  ;;  %vm812_vm10 = vmor %vm810_vm8, %vm811_vm7  ;;  %vm1948_vm13 = vcmp.eq.f32.partialorder %v930_v4, 8.507059e+37 }
 0x434   : > { %v807_v26 = vsub.f32 1.0, %v806_v21  ;;  %1282 = vrcp.f32 %v1914_v22  ;;  %v877_v50 = vmul.f32 0.125, %v876_v38  ;;  %v933_v52 = vor.u32 1.1754944e-38, %v932_v37 }
 0x435   : > { %v751_v30 = vadd.f32 %v1275_v63, %v750_v57  ;;  %v1046_v60 = vand.u32 2147483647, %v1912_v13  ;;  %v988_v7 = vand.u32 2147483647, %v1914_v22  ;;  %v990_v11 = vand.u32 2147483648, %v1914_v22 }
 0x436   : > { %v1279_v31 = vpop.eup %1278  ;;  %v808_v5 = vmul.f32 %v1277_v53, %v807_v26  ;;  %vm1042_vm1 = vweird.f32 %v1912_v13  ;;  %vm984_vm3 = vweird.f32 %v1914_v22 }
 0x437   : > { %v755_v33 = vsel %vm754_vm6, %v1275_v63, %v751_v30  ;;  %v922_v1 = vmul.f32 %v1279_v31, %v1902_v10  ;;  %vm927_vm12 = vweird.f32 %v1279_v31  ;;  %v1048_v63 = vand.u32 2147483648, %v1912_v13 }
 0x438   : > { %v760_v3 = vsel %vm1916_vm4, %v759_v25, %v755_v33  ;;  %v809_v35 = vadd.f32 %v1277_v53, %v808_v5  ;;  %vm928_vm14 = vmor %vm926_vm11, %vm927_vm12  ;;  %v878_v10 = vmul.f32 %v877_v50, %v1855_v18  ;;  %vm1047_vm4 = vcmp.eq.f32.partialorder %v1046_v60, 8.507059e+37 }
 0x439   : > { %v761_v39 = vmul.f32 0.125, %v760_v3  ;;  %v923_v40 = vsub.f32 1.0, %v922_v1  ;;  %v1281_v41 = vpop.eup %1280  ;;  %v1049_v12 = vor.u32 1.1754944e-38, %v1048_v63  ;;  %vm989_vm6 = vcmp.eq.f32.partialorder %v988_v7, 8.507059e+37 }
 0x43a   : > { %v813_v43 = vsel %vm812_vm10, %v1277_v53, %v809_v35  ;;  %v1283_v45 = vpop.eup %1282  ;;  %v1038_v49 = vmul.f32 %v1281_v41, %v1912_v13  ;;  %vm1043_vm15 = vweird.f32 %v1281_v41  ;;  %v991_v21 = vor.u32 1.1754944e-38, %v990_v11 }
 0x43b   : > { %v762_v46 = vmul.f32 %v761_v39, %v1861_v23  ;;  %v818_v47 = vsel %vm1937_vm9, %v817_v36, %v813_v43  ;;  %v924_v48 = vmul.f32 %v1279_v31, %v923_v40  ;;  %v980_v55 = vmul.f32 %v1283_v45, %v1914_v22  ;;  %vm1044_vm2 = vmor %vm1042_vm1, %vm1043_vm15 }
 0x43c   : > { %v819_v51 = vmul.f32 0.125, %v818_v47  ;;  %v1039_v59 = vsub.f32 1.0, %v1038_v49  ;;  %vm985_vm0 = vweird.f32 %v1283_v45 }
 0x43d   : > { %v925_v56 = vadd.f32 %v1279_v31, %v924_v48  ;;  %v763_v2 = vadd.f32 %v762_v46, %v705_v42  ;;  %v981_v6 = vsub.f32 1.0, %v980_v55  ;;  %vm986_vm5 = vmor %vm984_vm3, %vm985_vm0 }
 0x43e   : > { %v820_v23 = vmul.f32 %v819_v51, %v1865_v17  ;;  %v1040_v8 = vmul.f32 %v1281_v41, %v1039_v59 }
 0x43f   : > { %v929_v9 = vsel %vm928_vm14, %v1279_v31, %v925_v56  ;;  %v982_v54 = vmul.f32 %v1283_v45, %v981_v6 }
 0x440   : > { %v821_v14 = vadd.f32 %v820_v23, %v763_v2  ;;  %v934_v53 = vsel %vm1948_vm13, %v933_v52, %v929_v9  ;;  %v1041_v16 = vadd.f32 %v1281_v41, %v1040_v8 }
 0x441   : > { %v935_v17 = vmul.f32 0.125, %v934_v53  ;;  %v983_v19 = vadd.f32 %v1283_v45, %v982_v54 }
 0x442   : > { %v1045_v20 = vsel %vm1044_vm2, %v1281_v41, %v1041_v16  ;;  %v879_v57 = vadd.f32 %v878_v10, %v821_v14 }
 0x443   : > { %v936_v15 = vmul.f32 %v935_v17, %v1869_v61  ;;  %v1050_v24 = vsel %vm1047_vm4, %v1049_v12, %v1045_v20  ;;  %v987_v25 = vsel %vm986_vm5, %v1283_v45, %v983_v19 }
 0x444   : > { %v992_v13 = vsel %vm989_vm6, %v991_v21, %v987_v25  ;;  %v1051_v18 = vmul.f32 0.125, %v1050_v24 }
 0x445   : > { %v993_v26 = vmul.f32 0.125, %v992_v13  ;;  %v937_v22 = vadd.f32 %v936_v15, %v879_v57 }
 0x446   : > { %v1052_v61 = vmul.f32 %v1051_v18, %v1876_v0 }
 0x447   : > { %v994_v27 = vmul.f32 %v993_v26, %v1874_v62 }
 0x449   : > { %v995_v28 = vadd.f32 %v994_v27, %v937_v22 }
 0x44b   : > { %v1053_v29 = vadd.f32 %v1052_v61, %v995_v28 }
 0x44d   : > { %1054 = vst [vmem:[%s247_s9] sm:$0xff] %v1053_v29 }
 0x44e   : > { %1401 = shalt.err (!%p1398_p9)
}
 0x44f   : > { %1186 = dma.vmem_to_hbm [thread:$0]  (%p1546_p4), %s1069_s22, 128, %s1071_s11, %s1056_s12  }
 0x450 PF: > { %s1082_s20 = sand.u32 1, %s1432_s15   ;;  %p2033_p10 = scmp.ge.s32.totalorder %s1444_s18, 2 }
 0x451   : > { %s1083_s23 = scalar_lea.sflag [#allocation4], %s1082_s20 }
 0x452   : > { %p1200_p13 = pnand %p2033_p10, %p1550_p6 }
 0x454   : > { %p1201_p11 = pneg %p1200_p13 }
 0x456   : > { %1427 = dma.done.wait (%p1201_p11), %s1083_s23, 128  }
 0x457   : > { %1429 = vsyncadd (%p1201_p11), %s1083_s23, 4294967168  ;;  %p18_p0 = scmp.ge.s32.totalorder %s1520_s10, 4   ;;  %s2034_s15 = smov %s1436_s16 }
 0x458   : > { %s2035_s16 = smov %s1440_s17  ;;  %s2036_s17 = smov %s1531_s13 }
 0x459   : > { %s2037_s18 = smov %s1520_s10  ;;  %20 = sbr.rel (!%p18_p0) target bundleno = 6 (0x6), region = 89 }
 0x45e   :  { %1089 = vsyncpa [#allocation3], 1 }
 0x45f   :  { %1091 = vsyncpa [#allocation3 + $0x1], 1 }
 0x460   :  { %1092 = vsyncpa [#allocation6], 1 }
 0x461   :  { %1093 = vsyncpa [#allocation4], 1 }
 0x462   :  { %1095 = vsyncpa [#allocation4 + $0x1], 1 }

</bundles_post_ra>
